<compile_context>
chip_gen: v5e
topology: v5e:2x2
jax: 0.10.0
libtpu: 0.0.40
codegen_flags: <defaults>
</compile_context>

<pallas_src>
import jax
import jax.numpy as jnp
from jax import lax
from jax.experimental import pallas as pl
from jax.experimental.pallas import tpu as pltpu

F_IN, H1, H2, H_LSTM, H5, H6, H7 = 24, 100, 50, 60, 30, 30, 1
HP = 64                  # hidden width padded to 64 (aligned gate slices)
GP = 4 * HP              # 256: fused, padded gate width (i | f | g | o)

BATCH_TILE = 128         # rows per batch tile when B > 128
TIME_CHUNK = 32          # timesteps per grid step when T > 32


# ---------------------------------------------------------------------------
# Fused kernel: one (batch-tile, time-chunk) grid step.
# ---------------------------------------------------------------------------
def fused_model_kernel(x_ref,
                       w1, b1, w2, b2, w3, b3, w4, b4,
                       wih, whh, bg, pm, pa,
                       w5, b5, w6, b6, w7r, b7,
                       o_ref,
                       xg_scr, h_scr, h_car, c_car):
    """x_ref: (TC, TB, 24) time-major input block -> o_ref: (TC, TB).

    xg_scr: (TC, TB, 256) hoisted per-timestep gate input projections.
    h_scr : (TC, TB, 64)  LSTM hidden state for every timestep of the chunk.
    h_car, c_car: (TB, 64) LSTM state carried across time chunks.
    """
    TC, TB, _ = x_ref.shape

    # Reset the LSTM carry at the first time chunk of each batch tile.
    @pl.when(pl.program_id(1) == 0)
    def _():
        h_car[...] = jnp.zeros_like(h_car)
        c_car[...] = jnp.zeros_like(c_car)

    def dense_tanh(v, w, b):
        return jnp.tanh(
            jnp.dot(v, w[...], preferred_element_type=jnp.float32) + b[...])

    # ---- mlp1..mlp4 + tanh on all TC*TB rows at once ------------------------
    rows = x_ref[...].reshape(TC * TB, F_IN)
    h = dense_tanh(rows, w1, b1)          # (TC*TB, 100)
    h = dense_tanh(h, w2, b2)             # (TC*TB, 50)
    h = dense_tanh(h, w3, b3)             # (TC*TB, 50)
    f1 = dense_tanh(h, w4, b4)            # (TC*TB, 50)

    # ---- LSTM input projection + bias hoisted out of the recurrence --------
    xg = jnp.dot(f1, wih[...], preferred_element_type=jnp.float32) + bg[...]
    xg_scr[...] = xg.reshape(TC, TB, GP)  # (TC, TB, 256)

    # ---- LSTM recurrence: one 256-wide matmul + ONE 256-wide tanh per step --
    whh_v = whh[...]                      # (64, 256), hoisted load
    pm_v = pm[...]                        # (1, 256) post-scale (0.5 / 1.0)
    pa_v = pa[...]                        # (1, 256) post-shift (0.5 / 0.0)

    def step(t, carry):
        h_prev, c_prev = carry
        gates = xg_scr[t] + jnp.dot(h_prev, whh_v,
                                    preferred_element_type=jnp.float32)
        # i/f/o pre-activations were pre-scaled by 0.5 in the weights, so
        # sigmoid(x) = 0.5*tanh(0.5*x) + 0.5 and tanh(x) for the g gate come
        # out of a single fused 256-wide tanh + affine.
        act = jnp.tanh(gates) * pm_v + pa_v
        i_g = act[:, 0 * HP:1 * HP]
        f_g = act[:, 1 * HP:2 * HP]
        g_g = act[:, 2 * HP:3 * HP]
        o_g = act[:, 3 * HP:4 * HP]
        c_new = f_g * c_prev + i_g * g_g
        h_new = o_g * jnp.tanh(c_new)
        h_scr[t] = h_new
        return h_new, c_new

    unroll = TC if TC <= 8 else (4 if TC % 4 == 0 else
                                 (2 if TC % 2 == 0 else 1))
    h_last, c_last = lax.fori_loop(0, TC, step, (h_car[...], c_car[...]),
                                   unroll=unroll)
    h_car[...] = h_last
    c_car[...] = c_last

    # ---- mlp5..mlp7 + tanh on all hidden states of the chunk at once --------
    h_all = h_scr[...].reshape(TC * TB, HP)
    o = dense_tanh(h_all, w5, b5)         # (TC*TB, 30)  (pad rows of w5 = 0)
    o = dense_tanh(o, w6, b6)             # (TC*TB, 30)
    # Final 30 -> 1 layer as a lane reduction so the output stays lane-dense
    # (avoids an (N, 1) matmul and a relayout-heavy value reshape).
    o3 = o.reshape(TC, TB, H6)            # (TC, TB, 30)
    o_ref[...] = jnp.tanh(jnp.sum(o3 * w7r[...], axis=-1) + b7[...])


# ---------------------------------------------------------------------------
# Wrapper
# ---------------------------------------------------------------------------
@jax.jit
def model_forward(x, p):
    B, T, _ = x.shape

    # --- tiling (shapes are static under jit) --------------------------------
    if B > BATCH_TILE:
        TB = BATCH_TILE
        B_pad = ((B + TB - 1) // TB) * TB
    else:
        TB, B_pad = B, B
    if T > TIME_CHUNK:
        TC = TIME_CHUNK
        T_pad = ((T + TC - 1) // TC) * TC
    else:
        TC, T_pad = T, T

    x_tm = jnp.transpose(x, (1, 0, 2))                    # (T, B, 24)
    if (T_pad, B_pad) != (T, B):
        # Zero-pad; padded timesteps are appended at the end (LSTM is causal)
        # and padded batch rows are sliced off, so real outputs are unaffected.
        x_tm = jnp.pad(x_tm, ((0, T_pad - T), (0, B_pad - B), (0, 0)))

    # --- LSTM weights: fuse + pad the 4 gates to 64 columns each -------------
    # PyTorch gate order i | f | g | o.  The 0.5 pre-scale of the sigmoid
    # gates (i, f, o) is folded into the weights; the kernel applies a single
    # tanh and the (pm, pa) affine to recover sigmoid/tanh exactly.
    wih_p = jnp.zeros((H2, GP), jnp.float32)
    whh_p = jnp.zeros((HP, GP), jnp.float32)
    bg_p = jnp.zeros((1, GP), jnp.float32)
    pm = jnp.zeros((1, GP), jnp.float32)
    pa = jnp.zeros((1, GP), jnp.float32)
    for gi, g in enumerate(("i", "f", "g", "o")):
        s = 1.0 if g == "g" else 0.5
        c0 = gi * HP
        wih_p = wih_p.at[:, c0:c0 + H_LSTM].set(p[f"wih_{g}"] * s)
        whh_p = whh_p.at[:H_LSTM, c0:c0 + H_LSTM].set(p[f"whh_{g}"] * s)
        bg_p = bg_p.at[:, c0:c0 + H_LSTM].set(p[f"b_{g}"] * s)
        pm = pm.at[:, c0:c0 + HP].set(s)
        pa = pa.at[:, c0:c0 + HP].set(0.0 if g == "g" else 0.5)
    w5_p = jnp.zeros((HP, H5), jnp.float32).at[:H_LSTM, :].set(p["w5"])
    w7r = p["w7"].reshape(1, 1, H6)                        # (1, 1, 30)

    weights = (p["w1"], p["b1"], p["w2"], p["b2"], p["w3"], p["b3"],
               p["w4"], p["b4"],
               wih_p, whh_p, bg_p, pm, pa,
               w5_p, p["b5"], p["w6"], p["b6"], w7r, p["b7"])

    def rep(a):
        # Whole (tiny) parameter resident in VMEM; same block every grid step.
        nd = a.ndim
        return pl.BlockSpec(a.shape, lambda i, t: (0,) * nd)

    grid = (B_pad // TB, T_pad // TC)

    out_tm = pl.pallas_call(
        fused_model_kernel,
        out_shape=jax.ShapeDtypeStruct((T_pad, B_pad), jnp.float32),
        grid=grid,
        in_specs=[pl.BlockSpec((TC, TB, F_IN), lambda i, t: (t, i, 0))]
                 + [rep(a) for a in weights],
        out_specs=pl.BlockSpec((TC, TB), lambda i, t: (t, i)),
        scratch_shapes=[pltpu.VMEM((TC, TB, GP), jnp.float32),
                        pltpu.VMEM((TC, TB, HP), jnp.float32),
                        pltpu.VMEM((TB, HP), jnp.float32),
                        pltpu.VMEM((TB, HP), jnp.float32)],
        compiler_params=pltpu.CompilerParams(
            dimension_semantics=("parallel", "arbitrary"),
            vmem_limit_bytes=48 * 1024 * 1024),
    )(x_tm, *weights)

    out = out_tm[:T, :B]                                   # (T, B)
    return jnp.transpose(out)[:, :, None]                  # (B, T, 1)


# ---------------------------------------------------------------------------
# Deterministic parameter init (synthetic; shapes match the PyTorch module)
# ---------------------------------------------------------------------------
def init_params(key):
    keys = iter(jax.random.split(key, 32))

    def uni(shape, bound):
        return jax.random.uniform(next(keys), shape, jnp.float32, -bound, bound)

    def linear(fan_in, fan_out):
        b = 1.0 / jnp.sqrt(fan_in)
        return uni((fan_in, fan_out), b), uni((1, fan_out), b)

    p = {}
    p["w1"], p["b1"] = linear(F_IN, H1)
    p["w2"], p["b2"] = linear(H1, H2)
    p["w3"], p["b3"] = linear(H2, H2)
    p["w4"], p["b4"] = linear(H2, H2)
    # LSTM params (PyTorch gate order i, f, g, o); b = b_ih + b_hh combined.
    k = 1.0 / jnp.sqrt(H_LSTM)
    for gname in ("i", "f", "g", "o"):
        p[f"wih_{gname}"] = uni((H2, H_LSTM), k)
        p[f"whh_{gname}"] = uni((H_LSTM, H_LSTM), k)
        p[f"b_{gname}"] = uni((1, H_LSTM), k) + uni((1, H_LSTM), k)
    p["w5"], p["b5"] = linear(H_LSTM, H5)
    p["w6"], p["b6"] = linear(H5, H6)
    p["w7"], p["b7"] = linear(H6, H7)
    return p


# ---------------------------------------------------------------------------
# Pure-JAX reference (for correctness check)
# ---------------------------------------------------------------------------
def reference(x, p):
    def dt(v, w, b):
        return jnp.tanh(v @ w + b)

    h = dt(x, p["w1"], p["b1"])
    h = dt(h, p["w2"], p["b2"])
    h = dt(h, p["w3"], p["b3"])
    f1 = dt(h, p["w4"], p["b4"])

    B = x.shape[0]

    def step(carry, xt):
        h, c = carry
        i = jax.nn.sigmoid(xt @ p["wih_i"] + h @ p["whh_i"] + p["b_i"])
        f = jax.nn.sigmoid(xt @ p["wih_f"] + h @ p["whh_f"] + p["b_f"])
        g = jnp.tanh(xt @ p["wih_g"] + h @ p["whh_g"] + p["b_g"])
        o = jax.nn.sigmoid(xt @ p["wih_o"] + h @ p["whh_o"] + p["b_o"])
        c = f * c + i * g
        h = o * jnp.tanh(c)
        return (h, c), h

    init = (jnp.zeros((B, H_LSTM), jnp.float32),
            jnp.zeros((B, H_LSTM), jnp.float32))
    _, hs = jax.lax.scan(step, init, f1.transpose(1, 0, 2))
    f2 = hs.transpose(1, 0, 2)

    o = dt(f2, p["w5"], p["b5"])
    o = dt(o, p["w6"], p["b6"])
    o = dt(o, p["w7"], p["b7"])
    return o


if __name__ == "__main__":
    key = jax.random.PRNGKey(0)
    kx, kp = jax.random.split(key)
    B, T = 2, 8
    x = jax.random.normal(kx, (B, T, F_IN), jnp.float32)
    params = init_params(kp)

    out = jax.block_until_ready(model_forward(x, params))
    ref = jax.block_until_ready(reference(x, params))

    assert out.shape == (B, T, 1), out.shape
    assert jnp.allclose(out, ref, atol=1e-4, rtol=1e-4), \
        float(jnp.abs(out - ref).max())
    print("KERNEL_OK")
</pallas_src>

<mosaic_0001>
module attributes {stable_mosaic.version = 11 : i64} {
  func.func @fused_model_kernel(%arg0: i32, %arg1: i32, %arg2: memref<8x2x24xf32, #tpu.memory_space<vmem>>, %arg3: memref<24x100xf32, #tpu.memory_space<vmem>>, %arg4: memref<1x100xf32, #tpu.memory_space<vmem>>, %arg5: memref<100x50xf32, #tpu.memory_space<vmem>>, %arg6: memref<1x50xf32, #tpu.memory_space<vmem>>, %arg7: memref<50x50xf32, #tpu.memory_space<vmem>>, %arg8: memref<1x50xf32, #tpu.memory_space<vmem>>, %arg9: memref<50x50xf32, #tpu.memory_space<vmem>>, %arg10: memref<1x50xf32, #tpu.memory_space<vmem>>, %arg11: memref<50x256xf32, #tpu.memory_space<vmem>>, %arg12: memref<64x256xf32, #tpu.memory_space<vmem>>, %arg13: memref<1x256xf32, #tpu.memory_space<vmem>>, %arg14: memref<1x256xf32, #tpu.memory_space<vmem>>, %arg15: memref<1x256xf32, #tpu.memory_space<vmem>>, %arg16: memref<64x30xf32, #tpu.memory_space<vmem>>, %arg17: memref<1x30xf32, #tpu.memory_space<vmem>>, %arg18: memref<30x30xf32, #tpu.memory_space<vmem>>, %arg19: memref<1x30xf32, #tpu.memory_space<vmem>>, %arg20: memref<1x1x30xf32, #tpu.memory_space<vmem>>, %arg21: memref<1x1xf32, #tpu.memory_space<vmem>>, %arg22: memref<8x2xf32, #tpu.memory_space<vmem>>, %arg23: memref<8x2x256xf32, #tpu.memory_space<vmem>>, %arg24: memref<8x2x64xf32, #tpu.memory_space<vmem>>, %arg25: memref<2x64xf32, #tpu.memory_space<vmem>>, %arg26: memref<2x64xf32, #tpu.memory_space<vmem>>) attributes {dimension_semantics = [#tpu.dimension_semantics<parallel>, #tpu.dimension_semantics<arbitrary>], iteration_bounds = array<i64: 1, 1>, scalar_prefetch = 0 : i64, scratch_operands = 4 : i64, tpu.core_type = #tpu.core_type<tc>, window_params = [{transform_indices = @transform_0, window_bounds = array<i64: 8, 2, 24>}, {pipeline_mode = #tpu.pipeline_mode<synchronous>, transform_indices = @transform_1, window_bounds = array<i64: 24, 100>}, {pipeline_mode = #tpu.pipeline_mode<synchronous>, transform_indices = @transform_2, window_bounds = array<i64: 1, 100>}, {pipeline_mode = #tpu.pipeline_mode<synchronous>, transform_indices = @transform_3, window_bounds = array<i64: 100, 50>}, {pipeline_mode = #tpu.pipeline_mode<synchronous>, transform_indices = @transform_4, window_bounds = array<i64: 1, 50>}, {pipeline_mode = #tpu.pipeline_mode<synchronous>, transform_indices = @transform_5, window_bounds = array<i64: 50, 50>}, {pipeline_mode = #tpu.pipeline_mode<synchronous>, transform_indices = @transform_6, window_bounds = array<i64: 1, 50>}, {pipeline_mode = #tpu.pipeline_mode<synchronous>, transform_indices = @transform_7, window_bounds = array<i64: 50, 50>}, {pipeline_mode = #tpu.pipeline_mode<synchronous>, transform_indices = @transform_8, window_bounds = array<i64: 1, 50>}, {pipeline_mode = #tpu.pipeline_mode<synchronous>, transform_indices = @transform_9, window_bounds = array<i64: 50, 256>}, {pipeline_mode = #tpu.pipeline_mode<synchronous>, transform_indices = @transform_10, window_bounds = array<i64: 64, 256>}, {pipeline_mode = #tpu.pipeline_mode<synchronous>, transform_indices = @transform_11, window_bounds = array<i64: 1, 256>}, {pipeline_mode = #tpu.pipeline_mode<synchronous>, transform_indices = @transform_12, window_bounds = array<i64: 1, 256>}, {pipeline_mode = #tpu.pipeline_mode<synchronous>, transform_indices = @transform_13, window_bounds = array<i64: 1, 256>}, {pipeline_mode = #tpu.pipeline_mode<synchronous>, transform_indices = @transform_14, window_bounds = array<i64: 64, 30>}, {pipeline_mode = #tpu.pipeline_mode<synchronous>, transform_indices = @transform_15, window_bounds = array<i64: 1, 30>}, {pipeline_mode = #tpu.pipeline_mode<synchronous>, transform_indices = @transform_16, window_bounds = array<i64: 30, 30>}, {pipeline_mode = #tpu.pipeline_mode<synchronous>, transform_indices = @transform_17, window_bounds = array<i64: 1, 30>}, {pipeline_mode = #tpu.pipeline_mode<synchronous>, transform_indices = @transform_18, window_bounds = array<i64: 1, 1, 30>}, {pipeline_mode = #tpu.pipeline_mode<synchronous>, transform_indices = @transform_19, window_bounds = array<i64: 1, 1>}, {transform_indices = @transform_20, window_bounds = array<i64: 8, 2>}]} {
    %c0_i32 = arith.constant 0 : i32
    %0 = arith.cmpi eq, %arg1, %c0_i32 : i32
    %1 = arith.extui %0 : i1 to i32
    %c0_i32_0 = arith.constant 0 : i32
    %2 = arith.cmpi ne, %1, %c0_i32_0 : i32
    scf.if %2 {
      %cst_106 = arith.constant 0.000000e+00 : f32
      %251 = vector.broadcast %cst_106 : f32 to vector<2x64xf32>
      %c0_107 = arith.constant 0 : index
      %c0_108 = arith.constant 0 : index
      %252 = vector.load %arg25[%c0_107, %c0_108] : memref<2x64xf32, #tpu.memory_space<vmem>>, vector<2x64xf32>
      tpu.vector_store %arg25[%c0_107, %c0_108], %251 {strides = array<i32>} : memref<2x64xf32, #tpu.memory_space<vmem>>, vector<2x64xf32>,
      %cst_109 = arith.constant 0.000000e+00 : f32
      %253 = vector.broadcast %cst_109 : f32 to vector<2x64xf32>
      %c0_110 = arith.constant 0 : index
      %c0_111 = arith.constant 0 : index
      %254 = vector.load %arg26[%c0_110, %c0_111] : memref<2x64xf32, #tpu.memory_space<vmem>>, vector<2x64xf32>
      tpu.vector_store %arg26[%c0_110, %c0_111], %253 {strides = array<i32>} : memref<2x64xf32, #tpu.memory_space<vmem>>, vector<2x64xf32>,
    } else {
    }
    %c0 = arith.constant 0 : index
    %c0_1 = arith.constant 0 : index
    %c0_2 = arith.constant 0 : index
    %3 = vector.load %arg2[%c0, %c0_1, %c0_2] : memref<8x2x24xf32, #tpu.memory_space<vmem>>, vector<8x2x24xf32>
    %4 = vector.shape_cast %3 : vector<8x2x24xf32> to vector<16x24xf32>
    %c0_3 = arith.constant 0 : index
    %c0_4 = arith.constant 0 : index
    %5 = vector.load %arg3[%c0_3, %c0_4] : memref<24x100xf32, #tpu.memory_space<vmem>>, vector<24x100xf32>
    %cst = arith.constant dense<0.000000e+00> : vector<16x100xf32>
    %6 = tpu.matmul %4, %5, %cst {dimension_numbers = #tpu.dot_dimension_numbers<[1], [0], [0], [1], [0, 0, 1, 1], [], []>} : vector<16x24xf32>, vector<24x100xf32>, vector<16x100xf32> -> vector<16x100xf32>
    %c0_5 = arith.constant 0 : index
    %c0_6 = arith.constant 0 : index
    %7 = vector.load %arg4[%c0_5, %c0_6] : memref<1x100xf32, #tpu.memory_space<vmem>>, vector<1x100xf32>
    %8 = vector.broadcast %7 : vector<1x100xf32> to vector<16x100xf32>
    %9 = arith.addf %6, %8 : vector<16x100xf32>
    %10 = math.tanh %9 : vector<16x100xf32>
    %c0_7 = arith.constant 0 : index
    %c0_8 = arith.constant 0 : index
    %11 = vector.load %arg5[%c0_7, %c0_8] : memref<100x50xf32, #tpu.memory_space<vmem>>, vector<100x50xf32>
    %cst_9 = arith.constant dense<0.000000e+00> : vector<16x50xf32>
    %12 = tpu.matmul %10, %11, %cst_9 {dimension_numbers = #tpu.dot_dimension_numbers<[1], [0], [0], [1], [0, 0, 1, 1], [], []>} : vector<16x100xf32>, vector<100x50xf32>, vector<16x50xf32> -> vector<16x50xf32>
    %c0_10 = arith.constant 0 : index
    %c0_11 = arith.constant 0 : index
    %13 = vector.load %arg6[%c0_10, %c0_11] : memref<1x50xf32, #tpu.memory_space<vmem>>, vector<1x50xf32>
    %14 = vector.broadcast %13 : vector<1x50xf32> to vector<16x50xf32>
    %15 = arith.addf %12, %14 : vector<16x50xf32>
    %16 = math.tanh %15 : vector<16x50xf32>
    %c0_12 = arith.constant 0 : index
    %c0_13 = arith.constant 0 : index
    %17 = vector.load %arg7[%c0_12, %c0_13] : memref<50x50xf32, #tpu.memory_space<vmem>>, vector<50x50xf32>
    %cst_14 = arith.constant dense<0.000000e+00> : vector<16x50xf32>
    %18 = tpu.matmul %16, %17, %cst_14 {dimension_numbers = #tpu.dot_dimension_numbers<[1], [0], [0], [1], [0, 0, 1, 1], [], []>} : vector<16x50xf32>, vector<50x50xf32>, vector<16x50xf32> -> vector<16x50xf32>
    %c0_15 = arith.constant 0 : index
    %c0_16 = arith.constant 0 : index
    %19 = vector.load %arg8[%c0_15, %c0_16] : memref<1x50xf32, #tpu.memory_space<vmem>>, vector<1x50xf32>
    %20 = vector.broadcast %19 : vector<1x50xf32> to vector<16x50xf32>
    %21 = arith.addf %18, %20 : vector<16x50xf32>
    %22 = math.tanh %21 : vector<16x50xf32>
    %c0_17 = arith.constant 0 : index
    %c0_18 = arith.constant 0 : index
    %23 = vector.load %arg9[%c0_17, %c0_18] : memref<50x50xf32, #tpu.memory_space<vmem>>, vector<50x50xf32>
    %cst_19 = arith.constant dense<0.000000e+00> : vector<16x50xf32>
    %24 = tpu.matmul %22, %23, %cst_19 {dimension_numbers = #tpu.dot_dimension_numbers<[1], [0], [0], [1], [0, 0, 1, 1], [], []>} : vector<16x50xf32>, vector<50x50xf32>, vector<16x50xf32> -> vector<16x50xf32>
    %c0_20 = arith.constant 0 : index
    %c0_21 = arith.constant 0 : index
    %25 = vector.load %arg10[%c0_20, %c0_21] : memref<1x50xf32, #tpu.memory_space<vmem>>, vector<1x50xf32>
    %26 = vector.broadcast %25 : vector<1x50xf32> to vector<16x50xf32>
    %27 = arith.addf %24, %26 : vector<16x50xf32>
    %28 = math.tanh %27 : vector<16x50xf32>
    %c0_22 = arith.constant 0 : index
    %c0_23 = arith.constant 0 : index
    %29 = vector.load %arg11[%c0_22, %c0_23] : memref<50x256xf32, #tpu.memory_space<vmem>>, vector<50x256xf32>
    %cst_24 = arith.constant dense<0.000000e+00> : vector<16x256xf32>
    %30 = tpu.matmul %28, %29, %cst_24 {dimension_numbers = #tpu.dot_dimension_numbers<[1], [0], [0], [1], [0, 0, 1, 1], [], []>} : vector<16x50xf32>, vector<50x256xf32>, vector<16x256xf32> -> vector<16x256xf32>
    %c0_25 = arith.constant 0 : index
    %c0_26 = arith.constant 0 : index
    %31 = vector.load %arg13[%c0_25, %c0_26] : memref<1x256xf32, #tpu.memory_space<vmem>>, vector<1x256xf32>
    %32 = vector.broadcast %31 : vector<1x256xf32> to vector<16x256xf32>
    %33 = arith.addf %30, %32 : vector<16x256xf32>
    %34 = vector.shape_cast %33 : vector<16x256xf32> to vector<8x2x256xf32>
    %c0_27 = arith.constant 0 : index
    %c0_28 = arith.constant 0 : index
    %c0_29 = arith.constant 0 : index
    %35 = vector.load %arg23[%c0_27, %c0_28, %c0_29] : memref<8x2x256xf32, #tpu.memory_space<vmem>>, vector<8x2x256xf32>
    tpu.vector_store %arg23[%c0_27, %c0_28, %c0_29], %34 {strides = array<i32>} : memref<8x2x256xf32, #tpu.memory_space<vmem>>, vector<8x2x256xf32>,
    %c0_30 = arith.constant 0 : index
    %c0_31 = arith.constant 0 : index
    %36 = vector.load %arg12[%c0_30, %c0_31] : memref<64x256xf32, #tpu.memory_space<vmem>>, vector<64x256xf32>
    %c0_32 = arith.constant 0 : index
    %c0_33 = arith.constant 0 : index
    %37 = vector.load %arg14[%c0_32, %c0_33] : memref<1x256xf32, #tpu.memory_space<vmem>>, vector<1x256xf32>
    %c0_34 = arith.constant 0 : index
    %c0_35 = arith.constant 0 : index
    %38 = vector.load %arg15[%c0_34, %c0_35] : memref<1x256xf32, #tpu.memory_space<vmem>>, vector<1x256xf32>
    %c0_36 = arith.constant 0 : index
    %c0_37 = arith.constant 0 : index
    %39 = vector.load %arg25[%c0_36, %c0_37] : memref<2x64xf32, #tpu.memory_space<vmem>>, vector<2x64xf32>
    %c0_38 = arith.constant 0 : index
    %c0_39 = arith.constant 0 : index
    %40 = vector.load %arg26[%c0_38, %c0_39] : memref<2x64xf32, #tpu.memory_space<vmem>>, vector<2x64xf32>
    %c0_i32_40 = arith.constant 0 : i32
    %41 = arith.index_cast %c0_i32_40 : i32 to index
    %c0_41 = arith.constant 0 : index
    %c0_42 = arith.constant 0 : index
    %42 = vector.load %arg23[%41, %c0_41, %c0_42] : memref<8x2x256xf32, #tpu.memory_space<vmem>>, vector<1x2x256xf32>
    %43 = vector.shape_cast %42 : vector<1x2x256xf32> to vector<2x256xf32>
    %cst_43 = arith.constant dense<0.000000e+00> : vector<2x256xf32>
    %44 = tpu.matmul %39, %36, %cst_43 {dimension_numbers = #tpu.dot_dimension_numbers<[1], [0], [0], [1], [0, 0, 1, 1], [], []>} : vector<2x64xf32>, vector<64x256xf32>, vector<2x256xf32> -> vector<2x256xf32>
    %45 = arith.addf %43, %44 : vector<2x256xf32>
    %46 = math.tanh %45 : vector<2x256xf32>
    %47 = vector.broadcast %37 : vector<1x256xf32> to vector<2x256xf32>
    %48 = arith.mulf %46, %47 : vector<2x256xf32>
    %49 = vector.broadcast %38 : vector<1x256xf32> to vector<2x256xf32>
    %50 = arith.addf %48, %49 : vector<2x256xf32>
    %51 = vector.extract_strided_slice %50 {offsets = [0, 0], sizes = [2, 64], strides = [1, 1]} : vector<2x256xf32> to vector<2x64xf32>
    %52 = vector.extract_strided_slice %50 {offsets = [0, 64], sizes = [2, 64], strides = [1, 1]} : vector<2x256xf32> to vector<2x64xf32>
    %53 = vector.extract_strided_slice %50 {offsets = [0, 128], sizes = [2, 64], strides = [1, 1]} : vector<2x256xf32> to vector<2x64xf32>
    %54 = vector.extract_strided_slice %50 {offsets = [0, 192], sizes = [2, 64], strides = [1, 1]} : vector<2x256xf32> to vector<2x64xf32>
    %55 = arith.mulf %52, %40 : vector<2x64xf32>
    %56 = arith.mulf %51, %53 : vector<2x64xf32>
    %57 = arith.addf %55, %56 : vector<2x64xf32>
    %58 = math.tanh %57 : vector<2x64xf32>
    %59 = arith.mulf %54, %58 : vector<2x64xf32>
    %60 = arith.index_cast %c0_i32_40 : i32 to index
    %c0_44 = arith.constant 0 : index
    %c0_45 = arith.constant 0 : index
    %61 = vector.load %arg24[%60, %c0_44, %c0_45] : memref<8x2x64xf32, #tpu.memory_space<vmem>>, vector<1x2x64xf32>
    %62 = vector.shape_cast %61 : vector<1x2x64xf32> to vector<2x64xf32>
    %63 = vector.shape_cast %59 : vector<2x64xf32> to vector<1x2x64xf32>
    tpu.vector_store %arg24[%60, %c0_44, %c0_45], %63 {strides = array<i32>} : memref<8x2x64xf32, #tpu.memory_space<vmem>>, vector<1x2x64xf32>,
    %c1_i32 = arith.constant 1 : i32
    %64 = arith.index_cast %c1_i32 : i32 to index
    %c0_46 = arith.constant 0 : index
    %c0_47 = arith.constant 0 : index
    %65 = vector.load %arg23[%64, %c0_46, %c0_47] : memref<8x2x256xf32, #tpu.memory_space<vmem>>, vector<1x2x256xf32>
    %66 = vector.shape_cast %65 : vector<1x2x256xf32> to vector<2x256xf32>
    %cst_48 = arith.constant dense<0.000000e+00> : vector<2x256xf32>
    %67 = tpu.matmul %59, %36, %cst_48 {dimension_numbers = #tpu.dot_dimension_numbers<[1], [0], [0], [1], [0, 0, 1, 1], [], []>} : vector<2x64xf32>, vector<64x256xf32>, vector<2x256xf32> -> vector<2x256xf32>
    %68 = arith.addf %66, %67 : vector<2x256xf32>
    %69 = math.tanh %68 : vector<2x256xf32>
    %70 = vector.broadcast %37 : vector<1x256xf32> to vector<2x256xf32>
    %71 = arith.mulf %69, %70 : vector<2x256xf32>
    %72 = vector.broadcast %38 : vector<1x256xf32> to vector<2x256xf32>
    %73 = arith.addf %71, %72 : vector<2x256xf32>
    %74 = vector.extract_strided_slice %73 {offsets = [0, 0], sizes = [2, 64], strides = [1, 1]} : vector<2x256xf32> to vector<2x64xf32>
    %75 = vector.extract_strided_slice %73 {offsets = [0, 64], sizes = [2, 64], strides = [1, 1]} : vector<2x256xf32> to vector<2x64xf32>
    %76 = vector.extract_strided_slice %73 {offsets = [0, 128], sizes = [2, 64], strides = [1, 1]} : vector<2x256xf32> to vector<2x64xf32>
    %77 = vector.extract_strided_slice %73 {offsets = [0, 192], sizes = [2, 64], strides = [1, 1]} : vector<2x256xf32> to vector<2x64xf32>
    %78 = arith.mulf %75, %57 : vector<2x64xf32>
    %79 = arith.mulf %74, %76 : vector<2x64xf32>
    %80 = arith.addf %78, %79 : vector<2x64xf32>
    %81 = math.tanh %80 : vector<2x64xf32>
    %82 = arith.mulf %77, %81 : vector<2x64xf32>
    %83 = arith.index_cast %c1_i32 : i32 to index
    %c0_49 = arith.constant 0 : index
    %c0_50 = arith.constant 0 : index
    %84 = vector.load %arg24[%83, %c0_49, %c0_50] : memref<8x2x64xf32, #tpu.memory_space<vmem>>, vector<1x2x64xf32>
    %85 = vector.shape_cast %84 : vector<1x2x64xf32> to vector<2x64xf32>
    %86 = vector.shape_cast %82 : vector<2x64xf32> to vector<1x2x64xf32>
    tpu.vector_store %arg24[%83, %c0_49, %c0_50], %86 {strides = array<i32>} : memref<8x2x64xf32, #tpu.memory_space<vmem>>, vector<1x2x64xf32>,
    %c2_i32 = arith.constant 2 : i32
    %87 = arith.index_cast %c2_i32 : i32 to index
    %c0_51 = arith.constant 0 : index
    %c0_52 = arith.constant 0 : index
    %88 = vector.load %arg23[%87, %c0_51, %c0_52] : memref<8x2x256xf32, #tpu.memory_space<vmem>>, vector<1x2x256xf32>
    %89 = vector.shape_cast %88 : vector<1x2x256xf32> to vector<2x256xf32>
    %cst_53 = arith.constant dense<0.000000e+00> : vector<2x256xf32>
    %90 = tpu.matmul %82, %36, %cst_53 {dimension_numbers = #tpu.dot_dimension_numbers<[1], [0], [0], [1], [0, 0, 1, 1], [], []>} : vector<2x64xf32>, vector<64x256xf32>, vector<2x256xf32> -> vector<2x256xf32>
    %91 = arith.addf %89, %90 : vector<2x256xf32>
    %92 = math.tanh %91 : vector<2x256xf32>
    %93 = vector.broadcast %37 : vector<1x256xf32> to vector<2x256xf32>
    %94 = arith.mulf %92, %93 : vector<2x256xf32>
    %95 = vector.broadcast %38 : vector<1x256xf32> to vector<2x256xf32>
    %96 = arith.addf %94, %95 : vector<2x256xf32>
    %97 = vector.extract_strided_slice %96 {offsets = [0, 0], sizes = [2, 64], strides = [1, 1]} : vector<2x256xf32> to vector<2x64xf32>
    %98 = vector.extract_strided_slice %96 {offsets = [0, 64], sizes = [2, 64], strides = [1, 1]} : vector<2x256xf32> to vector<2x64xf32>
    %99 = vector.extract_strided_slice %96 {offsets = [0, 128], sizes = [2, 64], strides = [1, 1]} : vector<2x256xf32> to vector<2x64xf32>
    %100 = vector.extract_strided_slice %96 {offsets = [0, 192], sizes = [2, 64], strides = [1, 1]} : vector<2x256xf32> to vector<2x64xf32>
    %101 = arith.mulf %98, %80 : vector<2x64xf32>
    %102 = arith.mulf %97, %99 : vector<2x64xf32>
    %103 = arith.addf %101, %102 : vector<2x64xf32>
    %104 = math.tanh %103 : vector<2x64xf32>
    %105 = arith.mulf %100, %104 : vector<2x64xf32>
    %106 = arith.index_cast %c2_i32 : i32 to index
    %c0_54 = arith.constant 0 : index
    %c0_55 = arith.constant 0 : index
    %107 = vector.load %arg24[%106, %c0_54, %c0_55] : memref<8x2x64xf32, #tpu.memory_space<vmem>>, vector<1x2x64xf32>
    %108 = vector.shape_cast %107 : vector<1x2x64xf32> to vector<2x64xf32>
    %109 = vector.shape_cast %105 : vector<2x64xf32> to vector<1x2x64xf32>
    tpu.vector_store %arg24[%106, %c0_54, %c0_55], %109 {strides = array<i32>} : memref<8x2x64xf32, #tpu.memory_space<vmem>>, vector<1x2x64xf32>,
    %c3_i32 = arith.constant 3 : i32
    %110 = arith.index_cast %c3_i32 : i32 to index
    %c0_56 = arith.constant 0 : index
    %c0_57 = arith.constant 0 : index
    %111 = vector.load %arg23[%110, %c0_56, %c0_57] : memref<8x2x256xf32, #tpu.memory_space<vmem>>, vector<1x2x256xf32>
    %112 = vector.shape_cast %111 : vector<1x2x256xf32> to vector<2x256xf32>
    %cst_58 = arith.constant dense<0.000000e+00> : vector<2x256xf32>
    %113 = tpu.matmul %105, %36, %cst_58 {dimension_numbers = #tpu.dot_dimension_numbers<[1], [0], [0], [1], [0, 0, 1, 1], [], []>} : vector<2x64xf32>, vector<64x256xf32>, vector<2x256xf32> -> vector<2x256xf32>
    %114 = arith.addf %112, %113 : vector<2x256xf32>
    %115 = math.tanh %114 : vector<2x256xf32>
    %116 = vector.broadcast %37 : vector<1x256xf32> to vector<2x256xf32>
    %117 = arith.mulf %115, %116 : vector<2x256xf32>
    %118 = vector.broadcast %38 : vector<1x256xf32> to vector<2x256xf32>
    %119 = arith.addf %117, %118 : vector<2x256xf32>
    %120 = vector.extract_strided_slice %119 {offsets = [0, 0], sizes = [2, 64], strides = [1, 1]} : vector<2x256xf32> to vector<2x64xf32>
    %121 = vector.extract_strided_slice %119 {offsets = [0, 64], sizes = [2, 64], strides = [1, 1]} : vector<2x256xf32> to vector<2x64xf32>
    %122 = vector.extract_strided_slice %119 {offsets = [0, 128], sizes = [2, 64], strides = [1, 1]} : vector<2x256xf32> to vector<2x64xf32>
    %123 = vector.extract_strided_slice %119 {offsets = [0, 192], sizes = [2, 64], strides = [1, 1]} : vector<2x256xf32> to vector<2x64xf32>
    %124 = arith.mulf %121, %103 : vector<2x64xf32>
    %125 = arith.mulf %120, %122 : vector<2x64xf32>
    %126 = arith.addf %124, %125 : vector<2x64xf32>
    %127 = math.tanh %126 : vector<2x64xf32>
    %128 = arith.mulf %123, %127 : vector<2x64xf32>
    %129 = arith.index_cast %c3_i32 : i32 to index
    %c0_59 = arith.constant 0 : index
    %c0_60 = arith.constant 0 : index
    %130 = vector.load %arg24[%129, %c0_59, %c0_60] : memref<8x2x64xf32, #tpu.memory_space<vmem>>, vector<1x2x64xf32>
    %131 = vector.shape_cast %130 : vector<1x2x64xf32> to vector<2x64xf32>
    %132 = vector.shape_cast %128 : vector<2x64xf32> to vector<1x2x64xf32>
    tpu.vector_store %arg24[%129, %c0_59, %c0_60], %132 {strides = array<i32>} : memref<8x2x64xf32, #tpu.memory_space<vmem>>, vector<1x2x64xf32>,
    %c4_i32 = arith.constant 4 : i32
    %133 = arith.index_cast %c4_i32 : i32 to index
    %c0_61 = arith.constant 0 : index
    %c0_62 = arith.constant 0 : index
    %134 = vector.load %arg23[%133, %c0_61, %c0_62] : memref<8x2x256xf32, #tpu.memory_space<vmem>>, vector<1x2x256xf32>
    %135 = vector.shape_cast %134 : vector<1x2x256xf32> to vector<2x256xf32>
    %cst_63 = arith.constant dense<0.000000e+00> : vector<2x256xf32>
    %136 = tpu.matmul %128, %36, %cst_63 {dimension_numbers = #tpu.dot_dimension_numbers<[1], [0], [0], [1], [0, 0, 1, 1], [], []>} : vector<2x64xf32>, vector<64x256xf32>, vector<2x256xf32> -> vector<2x256xf32>
    %137 = arith.addf %135, %136 : vector<2x256xf32>
    %138 = math.tanh %137 : vector<2x256xf32>
    %139 = vector.broadcast %37 : vector<1x256xf32> to vector<2x256xf32>
    %140 = arith.mulf %138, %139 : vector<2x256xf32>
    %141 = vector.broadcast %38 : vector<1x256xf32> to vector<2x256xf32>
    %142 = arith.addf %140, %141 : vector<2x256xf32>
    %143 = vector.extract_strided_slice %142 {offsets = [0, 0], sizes = [2, 64], strides = [1, 1]} : vector<2x256xf32> to vector<2x64xf32>
    %144 = vector.extract_strided_slice %142 {offsets = [0, 64], sizes = [2, 64], strides = [1, 1]} : vector<2x256xf32> to vector<2x64xf32>
    %145 = vector.extract_strided_slice %142 {offsets = [0, 128], sizes = [2, 64], strides = [1, 1]} : vector<2x256xf32> to vector<2x64xf32>
    %146 = vector.extract_strided_slice %142 {offsets = [0, 192], sizes = [2, 64], strides = [1, 1]} : vector<2x256xf32> to vector<2x64xf32>
    %147 = arith.mulf %144, %126 : vector<2x64xf32>
    %148 = arith.mulf %143, %145 : vector<2x64xf32>
    %149 = arith.addf %147, %148 : vector<2x64xf32>
    %150 = math.tanh %149 : vector<2x64xf32>
    %151 = arith.mulf %146, %150 : vector<2x64xf32>
    %152 = arith.index_cast %c4_i32 : i32 to index
    %c0_64 = arith.constant 0 : index
    %c0_65 = arith.constant 0 : index
    %153 = vector.load %arg24[%152, %c0_64, %c0_65] : memref<8x2x64xf32, #tpu.memory_space<vmem>>, vector<1x2x64xf32>
    %154 = vector.shape_cast %153 : vector<1x2x64xf32> to vector<2x64xf32>
    %155 = vector.shape_cast %151 : vector<2x64xf32> to vector<1x2x64xf32>
    tpu.vector_store %arg24[%152, %c0_64, %c0_65], %155 {strides = array<i32>} : memref<8x2x64xf32, #tpu.memory_space<vmem>>, vector<1x2x64xf32>,
    %c5_i32 = arith.constant 5 : i32
    %156 = arith.index_cast %c5_i32 : i32 to index
    %c0_66 = arith.constant 0 : index
    %c0_67 = arith.constant 0 : index
    %157 = vector.load %arg23[%156, %c0_66, %c0_67] : memref<8x2x256xf32, #tpu.memory_space<vmem>>, vector<1x2x256xf32>
    %158 = vector.shape_cast %157 : vector<1x2x256xf32> to vector<2x256xf32>
    %cst_68 = arith.constant dense<0.000000e+00> : vector<2x256xf32>
    %159 = tpu.matmul %151, %36, %cst_68 {dimension_numbers = #tpu.dot_dimension_numbers<[1], [0], [0], [1], [0, 0, 1, 1], [], []>} : vector<2x64xf32>, vector<64x256xf32>, vector<2x256xf32> -> vector<2x256xf32>
    %160 = arith.addf %158, %159 : vector<2x256xf32>
    %161 = math.tanh %160 : vector<2x256xf32>
    %162 = vector.broadcast %37 : vector<1x256xf32> to vector<2x256xf32>
    %163 = arith.mulf %161, %162 : vector<2x256xf32>
    %164 = vector.broadcast %38 : vector<1x256xf32> to vector<2x256xf32>
    %165 = arith.addf %163, %164 : vector<2x256xf32>
    %166 = vector.extract_strided_slice %165 {offsets = [0, 0], sizes = [2, 64], strides = [1, 1]} : vector<2x256xf32> to vector<2x64xf32>
    %167 = vector.extract_strided_slice %165 {offsets = [0, 64], sizes = [2, 64], strides = [1, 1]} : vector<2x256xf32> to vector<2x64xf32>
    %168 = vector.extract_strided_slice %165 {offsets = [0, 128], sizes = [2, 64], strides = [1, 1]} : vector<2x256xf32> to vector<2x64xf32>
    %169 = vector.extract_strided_slice %165 {offsets = [0, 192], sizes = [2, 64], strides = [1, 1]} : vector<2x256xf32> to vector<2x64xf32>
    %170 = arith.mulf %167, %149 : vector<2x64xf32>
    %171 = arith.mulf %166, %168 : vector<2x64xf32>
    %172 = arith.addf %170, %171 : vector<2x64xf32>
    %173 = math.tanh %172 : vector<2x64xf32>
    %174 = arith.mulf %169, %173 : vector<2x64xf32>
    %175 = arith.index_cast %c5_i32 : i32 to index
    %c0_69 = arith.constant 0 : index
    %c0_70 = arith.constant 0 : index
    %176 = vector.load %arg24[%175, %c0_69, %c0_70] : memref<8x2x64xf32, #tpu.memory_space<vmem>>, vector<1x2x64xf32>
    %177 = vector.shape_cast %176 : vector<1x2x64xf32> to vector<2x64xf32>
    %178 = vector.shape_cast %174 : vector<2x64xf32> to vector<1x2x64xf32>
    tpu.vector_store %arg24[%175, %c0_69, %c0_70], %178 {strides = array<i32>} : memref<8x2x64xf32, #tpu.memory_space<vmem>>, vector<1x2x64xf32>,
    %c6_i32 = arith.constant 6 : i32
    %179 = arith.index_cast %c6_i32 : i32 to index
    %c0_71 = arith.constant 0 : index
    %c0_72 = arith.constant 0 : index
    %180 = vector.load %arg23[%179, %c0_71, %c0_72] : memref<8x2x256xf32, #tpu.memory_space<vmem>>, vector<1x2x256xf32>
    %181 = vector.shape_cast %180 : vector<1x2x256xf32> to vector<2x256xf32>
    %cst_73 = arith.constant dense<0.000000e+00> : vector<2x256xf32>
    %182 = tpu.matmul %174, %36, %cst_73 {dimension_numbers = #tpu.dot_dimension_numbers<[1], [0], [0], [1], [0, 0, 1, 1], [], []>} : vector<2x64xf32>, vector<64x256xf32>, vector<2x256xf32> -> vector<2x256xf32>
    %183 = arith.addf %181, %182 : vector<2x256xf32>
    %184 = math.tanh %183 : vector<2x256xf32>
    %185 = vector.broadcast %37 : vector<1x256xf32> to vector<2x256xf32>
    %186 = arith.mulf %184, %185 : vector<2x256xf32>
    %187 = vector.broadcast %38 : vector<1x256xf32> to vector<2x256xf32>
    %188 = arith.addf %186, %187 : vector<2x256xf32>
    %189 = vector.extract_strided_slice %188 {offsets = [0, 0], sizes = [2, 64], strides = [1, 1]} : vector<2x256xf32> to vector<2x64xf32>
    %190 = vector.extract_strided_slice %188 {offsets = [0, 64], sizes = [2, 64], strides = [1, 1]} : vector<2x256xf32> to vector<2x64xf32>
    %191 = vector.extract_strided_slice %188 {offsets = [0, 128], sizes = [2, 64], strides = [1, 1]} : vector<2x256xf32> to vector<2x64xf32>
    %192 = vector.extract_strided_slice %188 {offsets = [0, 192], sizes = [2, 64], strides = [1, 1]} : vector<2x256xf32> to vector<2x64xf32>
    %193 = arith.mulf %190, %172 : vector<2x64xf32>
    %194 = arith.mulf %189, %191 : vector<2x64xf32>
    %195 = arith.addf %193, %194 : vector<2x64xf32>
    %196 = math.tanh %195 : vector<2x64xf32>
    %197 = arith.mulf %192, %196 : vector<2x64xf32>
    %198 = arith.index_cast %c6_i32 : i32 to index
    %c0_74 = arith.constant 0 : index
    %c0_75 = arith.constant 0 : index
    %199 = vector.load %arg24[%198, %c0_74, %c0_75] : memref<8x2x64xf32, #tpu.memory_space<vmem>>, vector<1x2x64xf32>
    %200 = vector.shape_cast %199 : vector<1x2x64xf32> to vector<2x64xf32>
    %201 = vector.shape_cast %197 : vector<2x64xf32> to vector<1x2x64xf32>
    tpu.vector_store %arg24[%198, %c0_74, %c0_75], %201 {strides = array<i32>} : memref<8x2x64xf32, #tpu.memory_space<vmem>>, vector<1x2x64xf32>,
    %c7_i32 = arith.constant 7 : i32
    %202 = arith.index_cast %c7_i32 : i32 to index
    %c0_76 = arith.constant 0 : index
    %c0_77 = arith.constant 0 : index
    %203 = vector.load %arg23[%202, %c0_76, %c0_77] : memref<8x2x256xf32, #tpu.memory_space<vmem>>, vector<1x2x256xf32>
    %204 = vector.shape_cast %203 : vector<1x2x256xf32> to vector<2x256xf32>
    %cst_78 = arith.constant dense<0.000000e+00> : vector<2x256xf32>
    %205 = tpu.matmul %197, %36, %cst_78 {dimension_numbers = #tpu.dot_dimension_numbers<[1], [0], [0], [1], [0, 0, 1, 1], [], []>} : vector<2x64xf32>, vector<64x256xf32>, vector<2x256xf32> -> vector<2x256xf32>
    %206 = arith.addf %204, %205 : vector<2x256xf32>
    %207 = math.tanh %206 : vector<2x256xf32>
    %208 = vector.broadcast %37 : vector<1x256xf32> to vector<2x256xf32>
    %209 = arith.mulf %207, %208 : vector<2x256xf32>
    %210 = vector.broadcast %38 : vector<1x256xf32> to vector<2x256xf32>
    %211 = arith.addf %209, %210 : vector<2x256xf32>
    %212 = vector.extract_strided_slice %211 {offsets = [0, 0], sizes = [2, 64], strides = [1, 1]} : vector<2x256xf32> to vector<2x64xf32>
    %213 = vector.extract_strided_slice %211 {offsets = [0, 64], sizes = [2, 64], strides = [1, 1]} : vector<2x256xf32> to vector<2x64xf32>
    %214 = vector.extract_strided_slice %211 {offsets = [0, 128], sizes = [2, 64], strides = [1, 1]} : vector<2x256xf32> to vector<2x64xf32>
    %215 = vector.extract_strided_slice %211 {offsets = [0, 192], sizes = [2, 64], strides = [1, 1]} : vector<2x256xf32> to vector<2x64xf32>
    %216 = arith.mulf %213, %195 : vector<2x64xf32>
    %217 = arith.mulf %212, %214 : vector<2x64xf32>
    %218 = arith.addf %216, %217 : vector<2x64xf32>
    %219 = math.tanh %218 : vector<2x64xf32>
    %220 = arith.mulf %215, %219 : vector<2x64xf32>
    %221 = arith.index_cast %c7_i32 : i32 to index
    %c0_79 = arith.constant 0 : index
    %c0_80 = arith.constant 0 : index
    %222 = vector.load %arg24[%221, %c0_79, %c0_80] : memref<8x2x64xf32, #tpu.memory_space<vmem>>, vector<1x2x64xf32>
    %223 = vector.shape_cast %222 : vector<1x2x64xf32> to vector<2x64xf32>
    %224 = vector.shape_cast %220 : vector<2x64xf32> to vector<1x2x64xf32>
    tpu.vector_store %arg24[%221, %c0_79, %c0_80], %224 {strides = array<i32>} : memref<8x2x64xf32, #tpu.memory_space<vmem>>, vector<1x2x64xf32>,
    %c8_i32 = arith.constant 8 : i32
    %c0_81 = arith.constant 0 : index
    %c0_82 = arith.constant 0 : index
    %225 = vector.load %arg25[%c0_81, %c0_82] : memref<2x64xf32, #tpu.memory_space<vmem>>, vector<2x64xf32>
    tpu.vector_store %arg25[%c0_81, %c0_82], %220 {strides = array<i32>} : memref<2x64xf32, #tpu.memory_space<vmem>>, vector<2x64xf32>,
    %c0_83 = arith.constant 0 : index
    %c0_84 = arith.constant 0 : index
    %226 = vector.load %arg26[%c0_83, %c0_84] : memref<2x64xf32, #tpu.memory_space<vmem>>, vector<2x64xf32>
    tpu.vector_store %arg26[%c0_83, %c0_84], %218 {strides = array<i32>} : memref<2x64xf32, #tpu.memory_space<vmem>>, vector<2x64xf32>,
    %c0_85 = arith.constant 0 : index
    %c0_86 = arith.constant 0 : index
    %c0_87 = arith.constant 0 : index
    %227 = vector.load %arg24[%c0_85, %c0_86, %c0_87] : memref<8x2x64xf32, #tpu.memory_space<vmem>>, vector<8x2x64xf32>
    %228 = vector.shape_cast %227 : vector<8x2x64xf32> to vector<16x64xf32>
    %c0_88 = arith.constant 0 : index
    %c0_89 = arith.constant 0 : index
    %229 = vector.load %arg16[%c0_88, %c0_89] : memref<64x30xf32, #tpu.memory_space<vmem>>, vector<64x30xf32>
    %cst_90 = arith.constant dense<0.000000e+00> : vector<16x30xf32>
    %230 = tpu.matmul %228, %229, %cst_90 {dimension_numbers = #tpu.dot_dimension_numbers<[1], [0], [0], [1], [0, 0, 1, 1], [], []>} : vector<16x64xf32>, vector<64x30xf32>, vector<16x30xf32> -> vector<16x30xf32>
    %c0_91 = arith.constant 0 : index
    %c0_92 = arith.constant 0 : index
    %231 = vector.load %arg17[%c0_91, %c0_92] : memref<1x30xf32, #tpu.memory_space<vmem>>, vector<1x30xf32>
    %232 = vector.broadcast %231 : vector<1x30xf32> to vector<16x30xf32>
    %233 = arith.addf %230, %232 : vector<16x30xf32>
    %234 = math.tanh %233 : vector<16x30xf32>
    %c0_93 = arith.constant 0 : index
    %c0_94 = arith.constant 0 : index
    %235 = vector.load %arg18[%c0_93, %c0_94] : memref<30x30xf32, #tpu.memory_space<vmem>>, vector<30x30xf32>
    %cst_95 = arith.constant dense<0.000000e+00> : vector<16x30xf32>
    %236 = tpu.matmul %234, %235, %cst_95 {dimension_numbers = #tpu.dot_dimension_numbers<[1], [0], [0], [1], [0, 0, 1, 1], [], []>} : vector<16x30xf32>, vector<30x30xf32>, vector<16x30xf32> -> vector<16x30xf32>
    %c0_96 = arith.constant 0 : index
    %c0_97 = arith.constant 0 : index
    %237 = vector.load %arg19[%c0_96, %c0_97] : memref<1x30xf32, #tpu.memory_space<vmem>>, vector<1x30xf32>
    %238 = vector.broadcast %237 : vector<1x30xf32> to vector<16x30xf32>
    %239 = arith.addf %236, %238 : vector<16x30xf32>
    %240 = math.tanh %239 : vector<16x30xf32>
    %241 = vector.shape_cast %240 : vector<16x30xf32> to vector<8x2x30xf32>
    %c0_98 = arith.constant 0 : index
    %c0_99 = arith.constant 0 : index
    %c0_100 = arith.constant 0 : index
    %242 = vector.load %arg20[%c0_98, %c0_99, %c0_100] : memref<1x1x30xf32, #tpu.memory_space<vmem>>, vector<1x1x30xf32>
    %243 = vector.broadcast %242 : vector<1x1x30xf32> to vector<8x2x30xf32>
    %244 = arith.mulf %241, %243 : vector<8x2x30xf32>
    %cst_101 = arith.constant dense<0.000000e+00> : vector<8x2xf32>
    %245 = vector.multi_reduction <add>, %244, %cst_101 [2] : vector<8x2x30xf32> to vector<8x2xf32>
    %c0_102 = arith.constant 0 : index
    %c0_103 = arith.constant 0 : index
    %246 = vector.load %arg21[%c0_102, %c0_103] : memref<1x1xf32, #tpu.memory_space<vmem>>, vector<1x1xf32>
    %247 = vector.broadcast %246 : vector<1x1xf32> to vector<8x2xf32>
    %248 = arith.addf %245, %247 : vector<8x2xf32>
    %249 = math.tanh %248 : vector<8x2xf32>
    %c0_104 = arith.constant 0 : index
    %c0_105 = arith.constant 0 : index
    %250 = vector.load %arg22[%c0_104, %c0_105] : memref<8x2xf32, #tpu.memory_space<vmem>>, vector<8x2xf32>
    tpu.vector_store %arg22[%c0_104, %c0_105], %249 {strides = array<i32>} : memref<8x2xf32, #tpu.memory_space<vmem>>, vector<8x2xf32>,
    return
  }
  func.func @transform_0(%arg0: i32, %arg1: i32) -> (i32, i32, i32) {
    %c0_i32 = arith.constant 0 : i32
    %c0_i32_0 = arith.constant 0 : i32
    return %arg1, %arg0, %c0_i32 : i32, i32, i32
  }
  func.func @transform_1(%arg0: i32, %arg1: i32) -> (i32, i32) {
    %c0_i32 = arith.constant 0 : i32
    %c0_i32_0 = arith.constant 0 : i32
    %c0_i32_1 = arith.constant 0 : i32
    return %c0_i32, %c0_i32_0 : i32, i32
  }
  func.func @transform_2(%arg0: i32, %arg1: i32) -> (i32, i32) {
    %c0_i32 = arith.constant 0 : i32
    %c0_i32_0 = arith.constant 0 : i32
    %c0_i32_1 = arith.constant 0 : i32
    return %c0_i32, %c0_i32_0 : i32, i32
  }
  func.func @transform_3(%arg0: i32, %arg1: i32) -> (i32, i32) {
    %c0_i32 = arith.constant 0 : i32
    %c0_i32_0 = arith.constant 0 : i32
    %c0_i32_1 = arith.constant 0 : i32
    return %c0_i32, %c0_i32_0 : i32, i32
  }
  func.func @transform_4(%arg0: i32, %arg1: i32) -> (i32, i32) {
    %c0_i32 = arith.constant 0 : i32
    %c0_i32_0 = arith.constant 0 : i32
    %c0_i32_1 = arith.constant 0 : i32
    return %c0_i32, %c0_i32_0 : i32, i32
  }
  func.func @transform_5(%arg0: i32, %arg1: i32) -> (i32, i32) {
    %c0_i32 = arith.constant 0 : i32
    %c0_i32_0 = arith.constant 0 : i32
    %c0_i32_1 = arith.constant 0 : i32
    return %c0_i32, %c0_i32_0 : i32, i32
  }
  func.func @transform_6(%arg0: i32, %arg1: i32) -> (i32, i32) {
    %c0_i32 = arith.constant 0 : i32
    %c0_i32_0 = arith.constant 0 : i32
    %c0_i32_1 = arith.constant 0 : i32
    return %c0_i32, %c0_i32_0 : i32, i32
  }
  func.func @transform_7(%arg0: i32, %arg1: i32) -> (i32, i32) {
    %c0_i32 = arith.constant 0 : i32
    %c0_i32_0 = arith.constant 0 : i32
    %c0_i32_1 = arith.constant 0 : i32
    return %c0_i32, %c0_i32_0 : i32, i32
  }
  func.func @transform_8(%arg0: i32, %arg1: i32) -> (i32, i32) {
    %c0_i32 = arith.constant 0 : i32
    %c0_i32_0 = arith.constant 0 : i32
    %c0_i32_1 = arith.constant 0 : i32
    return %c0_i32, %c0_i32_0 : i32, i32
  }
  func.func @transform_9(%arg0: i32, %arg1: i32) -> (i32, i32) {
    %c0_i32 = arith.constant 0 : i32
    %c0_i32_0 = arith.constant 0 : i32
    %c0_i32_1 = arith.constant 0 : i32
    return %c0_i32, %c0_i32_0 : i32, i32
  }
  func.func @transform_10(%arg0: i32, %arg1: i32) -> (i32, i32) {
    %c0_i32 = arith.constant 0 : i32
    %c0_i32_0 = arith.constant 0 : i32
    %c0_i32_1 = arith.constant 0 : i32
    return %c0_i32, %c0_i32_0 : i32, i32
  }
  func.func @transform_11(%arg0: i32, %arg1: i32) -> (i32, i32) {
    %c0_i32 = arith.constant 0 : i32
    %c0_i32_0 = arith.constant 0 : i32
    %c0_i32_1 = arith.constant 0 : i32
    return %c0_i32, %c0_i32_0 : i32, i32
  }
  func.func @transform_12(%arg0: i32, %arg1: i32) -> (i32, i32) {
    %c0_i32 = arith.constant 0 : i32
    %c0_i32_0 = arith.constant 0 : i32
    %c0_i32_1 = arith.constant 0 : i32
    return %c0_i32, %c0_i32_0 : i32, i32
  }
  func.func @transform_13(%arg0: i32, %arg1: i32) -> (i32, i32) {
    %c0_i32 = arith.constant 0 : i32
    %c0_i32_0 = arith.constant 0 : i32
    %c0_i32_1 = arith.constant 0 : i32
    return %c0_i32, %c0_i32_0 : i32, i32
  }
  func.func @transform_14(%arg0: i32, %arg1: i32) -> (i32, i32) {
    %c0_i32 = arith.constant 0 : i32
    %c0_i32_0 = arith.constant 0 : i32
    %c0_i32_1 = arith.constant 0 : i32
    return %c0_i32, %c0_i32_0 : i32, i32
  }
  func.func @transform_15(%arg0: i32, %arg1: i32) -> (i32, i32) {
    %c0_i32 = arith.constant 0 : i32
    %c0_i32_0 = arith.constant 0 : i32
    %c0_i32_1 = arith.constant 0 : i32
    return %c0_i32, %c0_i32_0 : i32, i32
  }
  func.func @transform_16(%arg0: i32, %arg1: i32) -> (i32, i32) {
    %c0_i32 = arith.constant 0 : i32
    %c0_i32_0 = arith.constant 0 : i32
    %c0_i32_1 = arith.constant 0 : i32
    return %c0_i32, %c0_i32_0 : i32, i32
  }
  func.func @transform_17(%arg0: i32, %arg1: i32) -> (i32, i32) {
    %c0_i32 = arith.constant 0 : i32
    %c0_i32_0 = arith.constant 0 : i32
    %c0_i32_1 = arith.constant 0 : i32
    return %c0_i32, %c0_i32_0 : i32, i32
  }
  func.func @transform_18(%arg0: i32, %arg1: i32) -> (i32, i32, i32) {
    %c0_i32 = arith.constant 0 : i32
    %c0_i32_0 = arith.constant 0 : i32
    %c0_i32_1 = arith.constant 0 : i32
    %c0_i32_2 = arith.constant 0 : i32
    return %c0_i32, %c0_i32_0, %c0_i32_1 : i32, i32, i32
  }
  func.func @transform_19(%arg0: i32, %arg1: i32) -> (i32, i32) {
    %c0_i32 = arith.constant 0 : i32
    %c0_i32_0 = arith.constant 0 : i32
    %c0_i32_1 = arith.constant 0 : i32
    return %c0_i32, %c0_i32_0 : i32, i32
  }
  func.func @transform_20(%arg0: i32, %arg1: i32) -> (i32, i32) {
    %c0_i32 = arith.constant 0 : i32
    return %arg1, %arg0 : i32, i32
  }
}

</mosaic_0001>

<bundles_post_ra>
// kernel: model_forward.1
= control target key start
LH: loop header
LB: loop body
LE: loop exit
PB: predicated region body
PF: predicated region fallthrough
CT: control target
= control target key end

     0   :  { %vm168_vm0 = vcmask 1043456   ;;  %vm114_vm1 = vcmask 195584   ;;  %vm215_vm2 = vcmask 1041408   ;;  %vm161_vm3 = vcmask 818176   ;;  %s2077_s1 = inlined_call_operand.vmem [shape: f32[24,100], index: 1, kind: input, shape index: {}]   ;;  %s2078_s0 = inlined_call_operand.vmem [shape: f32[8,2,24], index: 0, kind: input, shape index: {}]   ;;  %s2079_s3 = inlined_call_operand.vmem [shape: f32[100,50], index: 3, kind: input, shape index: {}]   ;;  %s2080_s2 = inlined_call_operand.vmem [shape: f32[1,100], index: 2, kind: input, shape index: {}]   ;;  %s2081_s4 = inlined_call_operand.vmem [shape: f32[1,50], index: 4, kind: input, shape index: {}]   ;;  %s2082_s5 = inlined_call_operand.vmem [shape: f32[50,50], index: 5, kind: input, shape index: {}]   ;;  %s2083_s6 = inlined_call_operand.vmem [shape: f32[1,50], index: 6, kind: input, shape index: {}]   ;;  %s2084_s7 = inlined_call_operand.vmem [shape: f32[50,50], index: 7, kind: input, shape index: {}]   ;;  %s2085_s8 = inlined_call_operand.vmem [shape: f32[1,50], index: 8, kind: input, shape index: {}]   ;;  %s2086_s9 = inlined_call_operand.vmem [shape: f32[50,256], index: 9, kind: input, shape index: {}]   ;;  %s2087_s10 = inlined_call_operand.vmem [shape: f32[64,256], index: 10, kind: input, shape index: {}]   ;;  %s2088_s11 = inlined_call_operand.vmem [shape: f32[1,256], index: 11, kind: input, shape index: {}]   ;;  %s2089_s12 = inlined_call_operand.vmem [shape: f32[1,256], index: 12, kind: input, shape index: {}]   ;;  %s2090_s13 = inlined_call_operand.vmem [shape: f32[1,256], index: 13, kind: input, shape index: {}]   ;;  %s2091_s14 = inlined_call_operand.vmem [shape: f32[64,30], index: 14, kind: input, shape index: {}]   ;;  %s2092_s15 = inlined_call_operand.vmem [shape: f32[1,30], index: 15, kind: input, shape index: {}]   ;;  %s2093_s16 = inlined_call_operand.vmem [shape: f32[30,30], index: 16, kind: input, shape index: {}]   ;;  %s2094_s19 = inlined_call_operand.<no memory space> [shape: f32[1,1], index: 19, kind: input, shape index: {}]   ;;  %s2095_s17 = inlined_call_operand.vmem [shape: f32[1,30], index: 17, kind: input, shape index: {}]   ;;  %s2096_s18 = inlined_call_operand.vmem [shape: f32[1,1,30], index: 18, kind: input, shape index: {}]   ;;  %s2097_s20 = inlined_call_operand.vmem [shape: f32[8,2], index: 20, kind: output, shape index: {}]  }
   0x1   :  { %2101 = sst [smem:[#allocation7_spill]] %s2077_s1  ;;  %v203_v26 = vld [vmem:[%s2082_s5 + $0x30] sm:$0x3]  ;;  %v202_v27 = vld [vmem:[%s2082_s5 + $0x28] sm:$0xff]  ;;  %v201_v35 = vld [vmem:[%s2082_s5 + $0x20] sm:$0xff]  ;;  %vm208_vm4 = vcmask 408576  }
   0x2   :  { %2102 = sst [smem:[#allocation8_spill]] %s2078_s0  ;;  %1293 = vmatpush.msk.msra.mxu2 %vm215_vm2, %v203_v26  ;;  %v200_v36 = vld [vmem:[%s2082_s5 + $0x18] sm:$0xff]  ;;  %v199_v37 = vld [vmem:[%s2082_s5 + $0x10] sm:$0xff]  ;;  %v198_v38 = vld [vmem:[%s2082_s5 + $0x8] sm:$0xff]  ;;  %vm71_vm5 = vcmask 517120   ;;  %vm427_vm6 = vcmask 523264  }
   0x3   :  { %2103 = sst [smem:[#allocation9_spill]] %s2079_s3  ;;  %v197_v39 = vld [vmem:[%s2082_s5] sm:$0xff]  ;;  %v250_v40 = vld [vmem:[%s2084_s7 + $0x30] sm:$0x3]  ;;  %v249_v41 = vld [vmem:[%s2084_s7 + $0x28] sm:$0xff]  ;;  %vm374_vm7 = vcmask 1043458  }
   0x4   :  { %2104 = sst [smem:[#allocation10_spill]] %s2080_s2  ;;  %229 = vmatpush.msra.mxu2 %v202_v27  ;;  %1296 = vmatpush.msk.msra.mxu3 %vm215_vm2, %v250_v40  ;;  %v248_v49 = vld [vmem:[%s2084_s7 + $0x20] sm:$0xff]  ;;  %v247_v50 = vld [vmem:[%s2084_s7 + $0x18] sm:$0xff]  ;;  %v246_v51 = vld [vmem:[%s2084_s7 + $0x10] sm:$0xff]  ;;  %vm377_vm8 = vcmask 1045508   ;;  %vm380_vm9 = vcmask 1045504  }
   0x5   :  { %2105 = sst [smem:[#allocation11_spill]] %s2081_s4  ;;  %v245_v52 = vld [vmem:[%s2084_s7 + $0x8] sm:$0xff]  ;;  %v244_v53 = vld [vmem:[%s2084_s7] sm:$0xff]  ;;  %v300_v56 = vld [vmem:[%s2086_s9 + $0x58] sm:$0xff]  ;;  %vm1140_vm10 = vcmask 244736   ;;  %vm1201_vm11 = vcmask 238592  }
   0x6   :  { %s2106_s23 = sld [smem:[#allocation7_spill]]  ;;  %230 = vmatpush.msra.mxu2 %v201_v35  ;;  %274 = vmatpush.msra.mxu3 %v249_v41  ;;  %v302_v54 = vld [vmem:[%s2086_s9 + $0x68] sm:$0x3]  ;;  %v301_v55 = vld [vmem:[%s2086_s9 + $0x60] sm:$0x3]  ;;  %v299_v57 = vld [vmem:[%s2086_s9 + $0x50] sm:$0xff] }
   0x7   :  { %s2107_s26 = sld [smem:[#allocation8_spill]]  ;;  %1299 = vmatpush.msk.msra.mxu0 %vm215_vm2, %v301_v55  ;;  %v298_v58 = vld [vmem:[%s2086_s9 + $0x48] sm:$0xff]  ;;  %v1333_v59 = vld [vmem:[%s2083_s6] ss:$0 sm:$0xff]  ;;  %v1789_v26 = vld [vmem:[%s2087_s10 + $0x18] sm:$0xff]  ;;  %vm1267_vm12 = vcmask 1041409  }
   0x8   :  { %s2109_s0 = sld [smem:[#allocation10_spill]]  ;;  %231 = vmatpush.msra.mxu2 %v200_v36  ;;  %275 = vmatpush.msra.mxu3 %v248_v49  ;;  %v422_v55 = vld [vmem:[%s2089_s12] sm:$0x3]  ;;  %vm1269_vm13 = vcmask 1042434   ;;  %vm1271_vm14 = vcmask 1043459   ;;  %vm1273_vm15 = vcmask 1044484  }
   0x9   :  { %s2110_s22 = sld [smem:[#allocation11_spill]]  ;;  %331 = vmatpush.msra.mxu0 %v299_v57 }
   0xa   :  { %232 = vmatpush.msra.mxu2 %v199_v37  ;;  %276 = vmatpush.msra.mxu3 %v247_v50 }
   0xc   :  { %v84_v0 = vld [vmem:[%s2106_s23 + $0x10] sm:$0xff]  ;;  %v83_v1 = vld [vmem:[%s2106_s23 + $0x8] sm:$0xff]  ;;  %v82_v5 = vld [vmem:[%s2106_s23] sm:$0xff]  ;;  %s2108_s23 = sld [smem:[#allocation9_spill]]  ;;  %233 = vmatpush.msra.mxu2 %v198_v38  ;;  %277 = vmatpush.msra.mxu3 %v246_v51 }
   0xd   :  { %132 = vmatpush.msra.mxu1 %v84_v0  ;;  %v74_v2 = vld [vmem:[%s2107_s26] sm:$0x3]  ;;  %v75_v3 = vld [vmem:[%s2107_s26 + $0x2] sm:$0x3]  ;;  %v76_v4 = vld [vmem:[%s2107_s26 + $0x4] sm:$0x3] }
   0xe   :  { %v77_v6 = vld [vmem:[%s2107_s26 + $0x6] sm:$0x3]  ;;  %97 = vst [vmem:[#allocation1] ss:$4 sm:$0xff] %v74_v2  ;;  %v78_v7 = vld [vmem:[%s2107_s26 + $0x8] sm:$0x3]  ;;  %234 = vmatpush.msra.mxu2 %v197_v39  ;;  %278 = vmatpush.msra.mxu3 %v245_v52 }
   0xf   :  { %133 = vmatpush.msra.mxu1 %v83_v1  ;;  %99 = vst [vmem:[#allocation1 + $0x1] ss:$4 sm:$0xff] %v75_v3  ;;  %v79_v8 = vld [vmem:[%s2107_s26 + $0xa] sm:$0x3]  ;;  %v80_v10 = vld [vmem:[%s2107_s26 + $0xc] sm:$0x3] }
  0x10   :  { %101 = vst [vmem:[#allocation1 + $0x2] ss:$4 sm:$0xff] %v76_v4  ;;  %v81_v12 = vld [vmem:[%s2107_s26 + $0xe] sm:$0x3]  ;;  %v1331_v28 = vld [vmem:[%s2109_s0] ss:$0 sm:$0xff]  ;;  %279 = vmatpush.msra.mxu3 %v244_v53  ;;  %1302 = vmatpush.msk.msrb.mxu2 %vm215_vm2, %v302_v54 }
  0x11   :  { %134 = vmatpush.msra.mxu1 %v82_v5  ;;  %103 = vst [vmem:[#allocation1 + $0x3] ss:$4 sm:$0xff] %v77_v6  ;;  %v1332_v42 = vld [vmem:[%s2110_s22] ss:$0 sm:$0xff]  ;;  %v296_v3 = vld [vmem:[%s2086_s9 + $0x38] sm:$0xff]  ;;  %v295_v4 = vld [vmem:[%s2086_s9 + $0x30] sm:$0xff] }
  0x12   :  { %v156_v9 = vld [vmem:[%s2108_s23 + $0x60] sm:$0xf]  ;;  %v155_v11 = vld [vmem:[%s2108_s23 + $0x58] sm:$0xff]  ;;  %105 = vst [vmem:[#allocation1 + $0x20] ss:$4 sm:$0xff] %v78_v7  ;;  %v154_v13 = vld [vmem:[%s2108_s23 + $0x50] sm:$0xff]  ;;  %354 = vmatpush.msrb.mxu2 %v300_v56 }
  0x13   :  { %1290 = vmatpush.msk.msrb.mxu1 %vm168_vm0, %v156_v9  ;;  %107 = vst [vmem:[#allocation1 + $0x21] ss:$4 sm:$0xff] %v79_v8  ;;  %v153_v14 = vld [vmem:[%s2108_s23 + $0x48] sm:$0xff]  ;;  %v152_v15 = vld [vmem:[%s2108_s23 + $0x40] sm:$0xff]  ;;  %v151_v17 = vld [vmem:[%s2108_s23 + $0x38] sm:$0xff]  ;;  %vm1275_vm0 = vcmask 1045509  }
  0x14   :  { %109 = vst [vmem:[#allocation1 + $0x22] ss:$4 sm:$0xff] %v80_v10  ;;  %v150_v18 = vld [vmem:[%s2108_s23 + $0x30] sm:$0xff]  ;;  %v149_v19 = vld [vmem:[%s2108_s23 + $0x28] sm:$0xff]  ;;  %v148_v21 = vld [vmem:[%s2108_s23 + $0x20] sm:$0xff]  ;;  %355 = vmatpush.msrb.mxu2 %v298_v58 }
  0x15   :  { %176 = vmatpush.msrb.mxu1 %v155_v11  ;;  %111 = vst [vmem:[#allocation1 + $0x23] ss:$4 sm:$0xff] %v81_v12  ;;  %v147_v22 = vld [vmem:[%s2108_s23 + $0x18] sm:$0xff]  ;;  %v146_v23 = vld [vmem:[%s2108_s23 + $0x10] sm:$0xff]  ;;  %v145_v24 = vld [vmem:[%s2108_s23 + $0x8] sm:$0xff] }
  0x16   :  { %v144_v25 = vld [vmem:[%s2108_s23] sm:$0xff]  ;;  %356 = vmatpush.msrb.mxu2 %v296_v3  ;;  %v294_v5 = vld [vmem:[%s2086_s9 + $0x28] sm:$0xff]  ;;  %v292_v7 = vld [vmem:[%s2086_s9 + $0x18] sm:$0xff] }
  0x17   :  { %177 = vmatpush.msrb.mxu1 %v154_v13  ;;  %v297_v2 = vld [vmem:[%s2086_s9 + $0x40] sm:$0xff]  ;;  %v1686_v8 = vld [vmem:[%s2087_s10 + $0x70] sm:$0xff]  ;;  %v290_v10 = vld [vmem:[%s2086_s9 + $0x8] sm:$0xff] }
  0x18   :  { %v112_v16 = vld.sshfl [vmem:[#allocation1] sm:$0xff pattern:$0x73625140]  ;;  %332 = vmatpush.msra.mxu0 %v297_v2  ;;  %v291_v9 = vld [vmem:[%s2086_s9 + $0x10] sm:$0xff]  ;;  %357 = vmatpush.msrb.mxu2 %v294_v5 }
  0x19   :  { %178 = vmatpush.msrb.mxu1 %v153_v14  ;;  %v293_v6 = vld [vmem:[%s2086_s9 + $0x20] sm:$0xff]  ;;  %439 = vmatpush.msrb.mxu3 %v1686_v8  ;;  %v1708_v13 = vld [vmem:[%s2087_s10 + $0x50] sm:$0xff]  ;;  %v1713_v14 = vld [vmem:[%s2087_s10 + $0x78] sm:$0xff] }
  0x1a   :  { %1288 = vmatmul.msk.f32.vlgmr.msra.gmra.mxu1 %vm114_vm1, %v112_v16  ;;  %333 = vmatpush.msra.mxu0 %v295_v4  ;;  %v1699_v11 = vld [vmem:[%s2087_s10 + $0x60] sm:$0xff]  ;;  %v1726_v16 = vld [vmem:[%s2087_s10 + $0x68] sm:$0xff] }
  0x1b   :  { %179 = vmatpush.msrb.mxu1 %v152_v15  ;;  %358 = vmatpush.msrb.mxu2 %v292_v7  ;;  %v289_v12 = vld [vmem:[%s2086_s9] sm:$0xff] }
  0x1c   :  { %v113_v20 = vld.sshfl [vmem:[#allocation1 + $0x20] sm:$0xff pattern:$0x73625140]  ;;  %334 = vmatpush.msra.mxu0 %v293_v6  ;;  %440 = vmatpush.msrb.mxu3 %v1699_v11 }
  0x1d   :  { %180 = vmatpush.msrb.mxu1 %v151_v17  ;;  %359 = vmatpush.msrb.mxu2 %v290_v10  ;;  %v1721_v15 = vld [vmem:[%s2087_s10 + $0x40] sm:$0xff]  ;;  %v1731_v17 = vld [vmem:[%s2087_s10 + $0x30] sm:$0xff] }
  0x1e   :  { %335 = vmatpush.msra.mxu0 %v291_v9  ;;  %441 = vmatpush.msrb.mxu3 %v1708_v13  ;;  %v303_v38 = vld [vmem:[%s2088_s11] sm:$0x3] }
  0x1f   :  { %181 = vmatpush.msrb.mxu1 %v150_v18  ;;  %v1736_v18 = vld [vmem:[%s2087_s10 + $0x58] sm:$0xff]  ;;  %v306_v39 = vperm.slane %v303_v38, 1  ;;  %v305_v40 = vperm.slane %v303_v38, 0 }
  0x20   :  { %336 = vmatpush.msra.mxu0 %v289_v12  ;;  %442 = vmatpush.msrb.mxu3 %v1721_v15  ;;  %v479_v12 = vperm.slane %v422_v55, 0 }
  0x21   :  { %182 = vmatpush.msrb.mxu1 %v149_v19  ;;  %v1745_v19 = vld [vmem:[%s2087_s10 + $0x20] sm:$0xff] }
  0x22   :  { %1289 = vmatmul.msk.f32.gmra.mxu1 %vm114_vm1, %v113_v20  ;;  %459 = vmatpush.msrb.mxu0 %v1713_v14  ;;  %v1750_v20 = vld [vmem:[%s2087_s10 + $0x48] sm:$0xff]  ;;  %vm1277_vm1 = vcmask 1046534  }
  0x23   :  { %183 = vmatpush.msrb.mxu1 %v148_v21  ;;  %v1411_v21 = vmov 0.0   ;;  %443 = vmatpush.msrb.mxu3 %v1731_v17 }
  0x24   :  { %460 = vmatpush.msrb.mxu0 %v1726_v16  ;;  %72 = vst.msk [vmem:[#allocation4] sm:$0x3] %vm71_vm5, %v1411_v21 }
  0x25   :  { %184 = vmatpush.msrb.mxu1 %v147_v22  ;;  %73 = vst.msk [vmem:[#allocation5] sm:$0x3] %vm71_vm5, %v1411_v21  ;;  %444 = vmatpush.msrb.mxu3 %v1745_v19  ;;  %v1765_v22 = vld [vmem:[%s2087_s10 + $0x10] sm:$0xff] }
  0x26   :  { %461 = vmatpush.msrb.mxu0 %v1736_v18 }
  0x27   :  { %185 = vmatpush.msrb.mxu1 %v146_v23  ;;  %v1770_v23 = vld [vmem:[%s2087_s10 + $0x38] sm:$0xff]  ;;  %445 = vmatpush.msrb.mxu3 %v1765_v22 }
  0x28   :  { %462 = vmatpush.msrb.mxu0 %v1750_v20 }
  0x29   :  { %186 = vmatpush.msrb.mxu1 %v145_v24  ;;  %v1775_v24 = vld [vmem:[%s2087_s10] sm:$0xff] }
  0x2a   :  { %463 = vmatpush.msrb.mxu0 %v1770_v23  ;;  %446 = vmatpush.msrb.mxu3 %v1775_v24 }
  0x2b   :  { %187 = vmatpush.msrb.mxu1 %v144_v25  ;;  %v1784_v25 = vld [vmem:[%s2087_s10 + $0x28] sm:$0xff]  ;;  %v1795_v27 = vld [vmem:[#allocation4] sm:$0x3] }
  0x2c   :  { %464 = vmatpush.msrb.mxu0 %v1784_v25 }
  0x2d   :  { %531 = vmatpush.msra.mxu1 %v1686_v8 }
  0x2e   :  { %465 = vmatpush.msrb.mxu0 %v1789_v26 }
  0x2f   :  { %532 = vmatpush.msra.mxu1 %v1699_v11 }
  0x31   :  { %533 = vmatpush.msra.mxu1 %v1708_v13 }
  0x33   :  { %534 = vmatpush.msra.mxu1 %v1721_v15 }
  0x35   :  { %535 = vmatpush.msra.mxu1 %v1731_v17 }
  0x37   :  { %536 = vmatpush.msra.mxu1 %v1745_v19 }
  0x39   :  { %537 = vmatpush.msra.mxu1 %v1765_v22 }
  0x3b   :  { %538 = vmatpush.msra.mxu1 %v1775_v24 }
  0x97   :  { %v136_v29 = vpop.f32.mrf.mxu1 }
  0x98   :  { %v137_v30 = vadd.f32 %v1331_v28, %v136_v29  ;;  %v425_v29 = vld [vmem:[#allocation5] sm:$0x3] }
  0x9a   :  { %1339 = vtanh.f32 %v137_v30  ;;  %v1334_v30 = vld [vmem:[%s2085_s8] ss:$0 sm:$0xff] }
  0x9f   :  { %v139_v31 = vpop.f32.mrf.mxu1 }
  0xa0   :  { %v1340_v32 = vpop.eup %1339  ;;  %v140_v33 = vadd.f32 %v1331_v28, %v139_v31  ;;  %v1802_v28 = vld [vmem:[%s2087_s10 + $0x8] sm:$0xff]  ;;  %s1412_s10 = smov 64  }
  0xa1   :  { %1291 = vmatmul.msk.f32.vlgmr.msrb.gmra.mxu1 %vm161_vm3, %v1340_v32  ;;  %466 = vmatpush.msrb.mxu0 %v1802_v28 }
  0xa2   :  { %1341 = vtanh.f32 %v140_v33  ;;  %683 = vmatpush.msrb.mxu1 %v1686_v8  ;;  %493 = vrot.lane.b32.xlu0 %v425_v29, %s1412_s10 }
  0xa4   :  { %684 = vmatpush.msrb.mxu1 %v1699_v11 }
  0xa6   :  { %685 = vmatpush.msrb.mxu1 %v1708_v13 }
  0xa8   :  { %v1342_v34 = vpop.eup %1341  ;;  %686 = vmatpush.msrb.mxu1 %v1721_v15 }
  0xa9   :  { %1292 = vmatmul.msk.f32.gmra.mxu1 %vm161_vm3, %v1342_v34  ;;  %vm1282_vm3 = vcmask 15360  }
  0xaa   :  { %687 = vmatpush.msrb.mxu1 %v1731_v17 }
  0xac   :  { %688 = vmatpush.msrb.mxu1 %v1745_v19 }
  0xae   :  { %689 = vmatpush.msrb.mxu1 %v1765_v22 }
  0xb0   :  { %690 = vmatpush.msrb.mxu1 %v1775_v24 }
 0x11e   :  { %v189_v43 = vpop.f32.mrf.mxu1 }
 0x11f   :  { %v190_v44 = vadd.f32 %v1332_v42, %v189_v43 }
 0x121   :  { %1343 = vtanh.f32 %v190_v44 }
 0x126   :  { %v192_v45 = vpop.f32.mrf.mxu1 }
 0x127   :  { %v1344_v46 = vpop.eup %1343  ;;  %v193_v47 = vadd.f32 %v1332_v42, %v192_v45 }
 0x128   :  { %1294 = vmatmul.msk.f32.vlgmr.msra.gmra.mxu2 %vm208_vm4, %v1344_v46 }
 0x129   :  { %1345 = vtanh.f32 %v193_v47  ;;  %551 = vmatpush.msra.mxu2 %v1713_v14 }
 0x12b   :  { %552 = vmatpush.msra.mxu2 %v1726_v16 }
 0x12d   :  { %553 = vmatpush.msra.mxu2 %v1736_v18 }
 0x12f   :  { %v1346_v48 = vpop.eup %1345  ;;  %554 = vmatpush.msra.mxu2 %v1750_v20 }
 0x130   :  { %1295 = vmatmul.msk.f32.gmra.mxu2 %vm208_vm4, %v1346_v48 }
 0x131   :  { %555 = vmatpush.msra.mxu2 %v1770_v23 }
 0x133   :  { %556 = vmatpush.msra.mxu2 %v1784_v25 }
 0x135   :  { %557 = vmatpush.msra.mxu2 %v1789_v26 }
 0x137   :  { %558 = vmatpush.msra.mxu2 %v1802_v28 }
 0x1ab   :  { %v236_v60 = vpop.f32.mrf.mxu2 }
 0x1ac   :  { %v237_v61 = vadd.f32 %v1333_v59, %v236_v60 }
 0x1ae   :  { %1347 = vtanh.f32 %v237_v61  ;;  %v480_v61 = vperm.slane %v422_v55, 1 }
 0x1b0   :  { %v481_v21 = vrot.slane %v480_v61, 6 }
 0x1b3   :  { %v239_v62 = vpop.f32.mrf.mxu2 }
 0x1b4   :  { %v1348_v63 = vpop.eup %1347  ;;  %v240_v0 = vadd.f32 %v1333_v59, %v239_v62  ;;  %v423_v62 = vld [vmem:[%s2090_s13] sm:$0x3] }
 0x1b5   :  { %1297 = vmatmul.msk.f32.vlgmr.msra.gmra.mxu3 %vm208_vm4, %v1348_v63  ;;  %v487_v10 = vperm.slane %v423_v62, 1 }
 0x1b6   :  { %1349 = vtanh.f32 %v240_v0  ;;  %607 = vmatpush.msra.mxu3 %v1686_v8 }
 0x1b7   :  { %v488_v29 = vrot.slane %v487_v10, 6 }
 0x1b8   :  { %608 = vmatpush.msra.mxu3 %v1699_v11 }
 0x1ba   :  { %609 = vmatpush.msra.mxu3 %v1708_v13 }
 0x1bc   :  { %v1350_v1 = vpop.eup %1349  ;;  %610 = vmatpush.msra.mxu3 %v1721_v15 }
 0x1bd   :  { %1298 = vmatmul.msk.f32.gmra.mxu3 %vm208_vm4, %v1350_v1 }
 0x1be   :  { %611 = vmatpush.msra.mxu3 %v1731_v17 }
 0x1c0   :  { %612 = vmatpush.msra.mxu3 %v1745_v19 }
 0x1c2   :  { %613 = vmatpush.msra.mxu3 %v1765_v22 }
 0x1c4   :  { %614 = vmatpush.msra.mxu3 %v1775_v24 }
 0x1c5   :  { %1305 = vmatmul.msk.f32.vlgmr.msrb.gmra.mxu3 %vm427_vm6, %v1795_v27 }
 0x1c6   :  { %759 = vmatpush.msrb.mxu3 %v1686_v8 }
 0x1c8   :  { %760 = vmatpush.msrb.mxu3 %v1699_v11 }
 0x1ca   :  { %761 = vmatpush.msrb.mxu3 %v1708_v13 }
 0x1cc   :  { %762 = vmatpush.msrb.mxu3 %v1721_v15 }
 0x1ce   :  { %763 = vmatpush.msrb.mxu3 %v1731_v17 }
 0x1d0   :  { %764 = vmatpush.msrb.mxu3 %v1745_v19 }
 0x1d2   :  { %765 = vmatpush.msrb.mxu3 %v1765_v22 }
 0x1d4   :  { %766 = vmatpush.msrb.mxu3 %v1775_v24 }
 0x238   :  { %v281_v31 = vpop.f32.mrf.mxu3 }
 0x239   :  { %v282_v32 = vadd.f32 %v1334_v30, %v281_v31 }
 0x23b   :  { %1351 = vtanh.f32 %v282_v32 }
 0x240   :  { %v284_v33 = vpop.f32.mrf.mxu3 }
 0x241   :  { %v1352_v34 = vpop.eup %1351  ;;  %v285_v35 = vadd.f32 %v1334_v30, %v284_v33  ;;  %v1887_v30 = vsel %vm215_vm2, %v479_v12, %v481_v21 }
 0x242   :  { %1300 = vmatmul.msk.f32.vlgmr.msra.gmra.mxu0 %vm208_vm4, %v1352_v34  ;;  %1303 = vmatmul.msk.f32.vlgmr.msrb.gmra.mxu2 %vm208_vm4, %v1352_v34 }
 0x243   :  { %1353 = vtanh.f32 %v285_v35  ;;  %627 = vmatpush.msra.mxu0 %v1713_v14  ;;  %703 = vmatpush.msrb.mxu2 %v1713_v14 }
 0x245   :  { %628 = vmatpush.msra.mxu0 %v1726_v16  ;;  %704 = vmatpush.msrb.mxu2 %v1726_v16 }
 0x247   :  { %629 = vmatpush.msra.mxu0 %v1736_v18  ;;  %705 = vmatpush.msrb.mxu2 %v1736_v18 }
 0x248   :  { %v448_v60 = vpop.f32.mrf.mxu3 }
 0x249   :  { %v1354_v36 = vpop.eup %1353  ;;  %630 = vmatpush.msra.mxu0 %v1750_v20  ;;  %706 = vmatpush.msrb.mxu2 %v1750_v20 }
 0x24a   :  { %1301 = vmatmul.msk.f32.gmra.mxu0 %vm208_vm4, %v1354_v36  ;;  %1304 = vmatmul.msk.f32.gmra.mxu2 %vm208_vm4, %v1354_v36 }
 0x24b   :  { %631 = vmatpush.msra.mxu0 %v1770_v23  ;;  %707 = vmatpush.msrb.mxu2 %v1770_v23 }
 0x24d   :  { %632 = vmatpush.msra.mxu0 %v1784_v25  ;;  %708 = vmatpush.msrb.mxu2 %v1784_v25 }
 0x24f   :  { %633 = vmatpush.msra.mxu0 %v1789_v26  ;;  %709 = vmatpush.msrb.mxu2 %v1789_v26 }
 0x251   :  { %634 = vmatpush.msra.mxu0 %v1802_v28  ;;  %710 = vmatpush.msrb.mxu2 %v1802_v28 }
 0x252   :  { %1306 = vmatmul.msk.f32.vlgmr.msrb.gmra.mxu0 %vm427_vm6, %v1795_v27  ;;  %v486_v27 = vperm.slane %v423_v62, 0 }
 0x253   :  { %779 = vmatpush.msrb.mxu0 %v1713_v14 }
 0x254   :  { %v1890_v32 = vsel %vm215_vm2, %v486_v27, %v488_v29 }
 0x255   :  { %780 = vmatpush.msrb.mxu0 %v1726_v16 }
 0x257   :  { %781 = vmatpush.msrb.mxu0 %v1736_v18 }
 0x259   :  { %782 = vmatpush.msrb.mxu0 %v1750_v20 }
 0x25b   :  { %783 = vmatpush.msrb.mxu0 %v1770_v23 }
 0x25d   :  { %784 = vmatpush.msrb.mxu0 %v1784_v25 }
 0x25f   :  { %785 = vmatpush.msrb.mxu0 %v1789_v26 }
 0x261   :  { %786 = vmatpush.msrb.mxu0 %v1802_v28 }
 0x2bf   :  { %v338_v37 = vpop.f32.mrf.mxu0 }
 0x2c0   :  { %v339_v44 = vadd.f32 %v338_v37, %v305_v40  ;;  %v494_v37 = vpop.permute.xlu0 %493 }
 0x2c5   :  { %v361_v41 = vpop.f32.mrf.mxu2 }
 0x2c6   :  { %v362_v42 = vadd.f32 %v361_v41, %v306_v39 }
 0x2c7   :  { %v341_v43 = vpop.f32.mrf.mxu0 }
 0x2c8   :  { %v371_v45 = vrot.slane %v362_v42, 6  ;;  %v342_v57 = vadd.f32 %v341_v43, %v305_v40 }
 0x2ca   :  { %v373_v46 = vsel %vm215_vm2, %v339_v44, %v371_v45  ;;  %v375_v47 = vsel %vm374_vm7, %v339_v44, %v371_v45  ;;  %v378_v48 = vsel %vm377_vm8, %v339_v44, %v371_v45  ;;  %v381_v49 = vsel %vm380_vm9, %v371_v45, %v339_v44 }
 0x2cb   :  { %v376_v50 = vrot.slane %v375_v47, 2  ;;  %v379_v51 = vrot.slane %v378_v48, 4  ;;  %v382_v52 = vrot.slane %v381_v49, 6  ;;  %398 = vst [vmem:[#allocation2] sm:$0xf] %v373_v46 }
 0x2cd   :  { %399 = vst [vmem:[#allocation2 + $0x4] sm:$0xf] %v376_v50  ;;  %v364_v53 = vpop.f32.mrf.mxu2 }
 0x2ce   :  { %400 = vst [vmem:[#allocation2 + $0x8] sm:$0xf] %v379_v51  ;;  %v365_v54 = vadd.f32 %v364_v53, %v306_v39 }
 0x2cf   :  { %401 = vst [vmem:[#allocation2 + $0xc] sm:$0xf] %v382_v52  ;;  %v468_v56 = vpop.f32.mrf.mxu0 }
 0x2d0   :  { %v372_v58 = vrot.slane %v365_v54, 6  ;;  %v473_v59 = vrot.slane %v468_v56, 6 }
 0x2d2   :  { %v383_v63 = vsel %vm215_vm2, %v342_v57, %v372_v58  ;;  %v384_v0 = vsel %vm374_vm7, %v342_v57, %v372_v58  ;;  %v386_v1 = vsel %vm377_vm8, %v342_v57, %v372_v58  ;;  %v388_v2 = vsel %vm380_vm9, %v372_v58, %v342_v57  ;;  %v426_v3 = vld [vmem:[#allocation2] sm:$0xf] }
 0x2d3   :  { %v385_v4 = vrot.slane %v384_v0, 2  ;;  %v387_v5 = vrot.slane %v386_v1, 4  ;;  %v389_v6 = vrot.slane %v388_v2, 6  ;;  %402 = vst [vmem:[#allocation2 + $0x10] sm:$0xf] %v383_v63  ;;  %v474_v7 = vsel %vm215_vm2, %v448_v60, %v473_v59 }
 0x2d4   :  { %v476_v9 = vadd.f32 %v474_v7, %v426_v3  ;;  %v519_v49 = vld [vmem:[#allocation2 + $0x4] sm:$0xf] }
 0x2d5   :  { %403 = vst [vmem:[#allocation2 + $0x14] sm:$0xf] %v385_v4  ;;  %v595_v4 = vld [vmem:[#allocation2 + $0x8] sm:$0xf] }
 0x2d6   :  { %404 = vst [vmem:[#allocation2 + $0x18] sm:$0xf] %v387_v5  ;;  %1355 = vtanh.f32 %v476_v9 }
 0x2d7   :  { %405 = vst [vmem:[#allocation2 + $0x1c] sm:$0xf] %v389_v6 }
 0x2dc   :  { %v1356_v31 = vpop.eup %1355 }
 0x2dd   :  { %v484_v33 = vmul.f32 %v1356_v31, %v1887_v30 }
 0x2df   :  { %v491_v34 = vadd.f32 %v1890_v32, %v484_v33 }
 0x2e1   :  { %507 = vrot.lane.b32.xlu1 %v491_v34, %s1412_s10  ;;  %v498_v35 = vrot.slane %v491_v34, 2  ;;  %v496_v38 = vmul.f32 %v494_v37, %v491_v34 }
 0x2e3   :  { %v500_v36 = vmul.f32 %v498_v35, %v491_v34 }
 0x2e5   :  { %502 = vrot.lane.b32.xlu0 %v500_v36, %s1412_s10 }
 0x353   :  { %v508_v42 = vpop.permute.xlu1 %507 }
 0x354   :  { %v509_v43 = vrot.slane %v508_v42, 2 }
 0x357   :  { %v503_v39 = vpop.permute.xlu0 %502 }
 0x358   :  { %v505_v40 = vadd.f32 %v503_v39, %v496_v38 }
 0x35a   :  { %1357 = vtanh.f32 %v505_v40 }
 0x360   :  { %v1358_v41 = vpop.eup %1357 }
 0x361   :  { %512 = vrot.lane.b32.xlu1 %v1358_v41, %s1412_s10 }
 0x3d3   :  { %v513_v44 = vpop.permute.xlu1 %512 }
 0x3d4   :  { %v515_v45 = vmul.f32 %v513_v44, %v509_v43  ;;  %v747_v44 = vld [vmem:[#allocation2 + $0x10] sm:$0xf] }
 0x3d6   :  { %517 = vst.msk [vmem:[#allocation3] sm:$0x3] %vm71_vm5, %v515_v45  ;;  %1307 = vmatmul.msk.f32.vlgmr.msra.gmra.mxu1 %vm427_vm6, %v515_v45  ;;  %1308 = vmatmul.msk.f32.vlgmr.msra.gmra.mxu2 %vm427_vm6, %v515_v45 }
 0x3d7   :  { %835 = vmatpush.msra.mxu1 %v1686_v8  ;;  %855 = vmatpush.msra.mxu2 %v1713_v14 }
 0x3d9   :  { %836 = vmatpush.msra.mxu1 %v1699_v11  ;;  %856 = vmatpush.msra.mxu2 %v1726_v16 }
 0x3db   :  { %837 = vmatpush.msra.mxu1 %v1708_v13  ;;  %857 = vmatpush.msra.mxu2 %v1736_v18 }
 0x3dd   :  { %838 = vmatpush.msra.mxu1 %v1721_v15  ;;  %858 = vmatpush.msra.mxu2 %v1750_v20 }
 0x3df   :  { %839 = vmatpush.msra.mxu1 %v1731_v17  ;;  %859 = vmatpush.msra.mxu2 %v1770_v23 }
 0x3e1   :  { %840 = vmatpush.msra.mxu1 %v1745_v19  ;;  %860 = vmatpush.msra.mxu2 %v1784_v25 }
 0x3e3   :  { %841 = vmatpush.msra.mxu1 %v1765_v22  ;;  %861 = vmatpush.msra.mxu2 %v1789_v26 }
 0x3e5   :  { %842 = vmatpush.msra.mxu1 %v1775_v24  ;;  %862 = vmatpush.msra.mxu2 %v1802_v28 }
 0x453   :  { %v540_v48 = vpop.f32.mrf.mxu1 }
 0x459   :  { %v560_v46 = vpop.f32.mrf.mxu2 }
 0x45a   :  { %v565_v47 = vrot.slane %v560_v46, 6 }
 0x45c   :  { %v566_v50 = vsel %vm215_vm2, %v540_v48, %v565_v47 }
 0x45d   :  { %v568_v51 = vadd.f32 %v566_v50, %v519_v49 }
 0x45f   :  { %1359 = vtanh.f32 %v568_v51 }
 0x465   :  { %v1360_v52 = vpop.eup %1359 }
 0x466   :  { %v570_v53 = vmul.f32 %v1360_v52, %v1887_v30 }
 0x468   :  { %v571_v54 = vadd.f32 %v570_v53, %v1890_v32 }
 0x46a   :  { %v574_v55 = vrot.slane %v571_v54, 2  ;;  %v572_v57 = vmul.f32 %v571_v54, %v505_v40 }
 0x46c   :  { %v576_v56 = vmul.f32 %v574_v55, %v571_v54 }
 0x46e   :  { %578 = vrot.lane.b32.xlu2 %v576_v56, %s1412_s10 }
 0x476   :  { %583 = vrot.lane.b32.xlu2 %v571_v54, %s1412_s10 }
 0x4c8   :  { %v579_v58 = vpop.permute.xlu2 %578 }
 0x4c9   :  { %v581_v59 = vadd.f32 %v579_v58, %v572_v57 }
 0x4cb   :  { %1361 = vtanh.f32 %v581_v59 }
 0x4d0   :  { %v584_v61 = vpop.permute.xlu2 %583 }
 0x4d1   :  { %v1362_v60 = vpop.eup %1361  ;;  %v585_v62 = vrot.slane %v584_v61, 2 }
 0x4d2   :  { %588 = vrot.lane.b32.xlu0 %v1362_v60, %s1412_s10 }
 0x544   :  { %v589_v63 = vpop.permute.xlu0 %588 }
 0x545   :  { %v591_v0 = vmul.f32 %v589_v63, %v585_v62 }
 0x547   :  { %593 = vst.msk [vmem:[#allocation3 + $0x2] sm:$0x3] %vm71_vm5, %v591_v0  ;;  %1309 = vmatmul.msk.f32.vlgmr.msra.gmra.mxu3 %vm427_vm6, %v591_v0  ;;  %1310 = vmatmul.msk.f32.vlgmr.msra.gmra.mxu0 %vm427_vm6, %v591_v0  ;;  %v823_v0 = vld [vmem:[#allocation2 + $0x14] sm:$0xf] }
 0x548   :  { %911 = vmatpush.msra.mxu3 %v1686_v8  ;;  %931 = vmatpush.msra.mxu0 %v1713_v14 }
 0x54a   :  { %912 = vmatpush.msra.mxu3 %v1699_v11  ;;  %932 = vmatpush.msra.mxu0 %v1726_v16 }
 0x54c   :  { %913 = vmatpush.msra.mxu3 %v1708_v13  ;;  %933 = vmatpush.msra.mxu0 %v1736_v18 }
 0x54e   :  { %914 = vmatpush.msra.mxu3 %v1721_v15  ;;  %934 = vmatpush.msra.mxu0 %v1750_v20 }
 0x550   :  { %915 = vmatpush.msra.mxu3 %v1731_v17  ;;  %935 = vmatpush.msra.mxu0 %v1770_v23 }
 0x552   :  { %916 = vmatpush.msra.mxu3 %v1745_v19  ;;  %936 = vmatpush.msra.mxu0 %v1784_v25 }
 0x554   :  { %917 = vmatpush.msra.mxu3 %v1765_v22  ;;  %937 = vmatpush.msra.mxu0 %v1789_v26 }
 0x556   :  { %918 = vmatpush.msra.mxu3 %v1775_v24  ;;  %938 = vmatpush.msra.mxu0 %v1802_v28 }
 0x5c4   :  { %v636_v1 = vpop.f32.mrf.mxu0 }
 0x5c5   :  { %v641_v2 = vrot.slane %v636_v1, 6 }
 0x5ca   :  { %v616_v3 = vpop.f32.mrf.mxu3 }
 0x5cb   :  { %v642_v5 = vsel %vm215_vm2, %v616_v3, %v641_v2 }
 0x5cc   :  { %v644_v6 = vadd.f32 %v642_v5, %v595_v4 }
 0x5ce   :  { %1363 = vtanh.f32 %v644_v6 }
 0x5d4   :  { %v1364_v7 = vpop.eup %1363 }
 0x5d5   :  { %v646_v9 = vmul.f32 %v1364_v7, %v1887_v30 }
 0x5d7   :  { %v647_v10 = vadd.f32 %v646_v9, %v1890_v32 }
 0x5d9   :  { %659 = vrot.lane.b32.xlu2 %v647_v10, %s1412_s10  ;;  %v650_v12 = vrot.slane %v647_v10, 2  ;;  %v648_v27 = vmul.f32 %v647_v10, %v581_v59 }
 0x5db   :  { %v652_v21 = vmul.f32 %v650_v12, %v647_v10 }
 0x5dd   :  { %654 = vrot.lane.b32.xlu1 %v652_v21, %s1412_s10 }
 0x633   :  { %v660_v34 = vpop.permute.xlu2 %659 }
 0x634   :  { %v661_v35 = vrot.slane %v660_v34, 2 }
 0x64f   :  { %v655_v29 = vpop.permute.xlu1 %654 }
 0x650   :  { %v657_v31 = vadd.f32 %v655_v29, %v648_v27 }
 0x652   :  { %1365 = vtanh.f32 %v657_v31 }
 0x658   :  { %v1366_v33 = vpop.eup %1365 }
 0x659   :  { %664 = vrot.lane.b32.xlu0 %v1366_v33, %s1412_s10 }
 0x6cb   :  { %v665_v36 = vpop.permute.xlu0 %664 }
 0x6cc   :  { %v667_v37 = vmul.f32 %v665_v36, %v661_v35 }
 0x6ce   :  { %669 = vst.msk [vmem:[#allocation3 + $0x4] sm:$0x3] %vm71_vm5, %v667_v37  ;;  %1311 = vmatmul.msk.f32.vlgmr.msrb.gmra.mxu1 %vm427_vm6, %v667_v37  ;;  %1312 = vmatmul.msk.f32.vlgmr.msrb.gmra.mxu2 %vm427_vm6, %v667_v37 }
 0x6cf   :  { %987 = vmatpush.msrb.mxu1 %v1686_v8  ;;  %1007 = vmatpush.msrb.mxu2 %v1713_v14  ;;  %v671_v14 = vld [vmem:[#allocation2 + $0xc] sm:$0xf] }
 0x6d1   :  { %988 = vmatpush.msrb.mxu1 %v1699_v11  ;;  %1008 = vmatpush.msrb.mxu2 %v1726_v16 }
 0x6d3   :  { %989 = vmatpush.msrb.mxu1 %v1708_v13  ;;  %1009 = vmatpush.msrb.mxu2 %v1736_v18 }
 0x6d5   :  { %990 = vmatpush.msrb.mxu1 %v1721_v15  ;;  %1010 = vmatpush.msrb.mxu2 %v1750_v20 }
 0x6d7   :  { %991 = vmatpush.msrb.mxu1 %v1731_v17  ;;  %1011 = vmatpush.msrb.mxu2 %v1770_v23 }
 0x6d9   :  { %992 = vmatpush.msrb.mxu1 %v1745_v19  ;;  %1012 = vmatpush.msrb.mxu2 %v1784_v25 }
 0x6db   :  { %993 = vmatpush.msrb.mxu1 %v1765_v22  ;;  %1013 = vmatpush.msrb.mxu2 %v1789_v26 }
 0x6dd   :  { %994 = vmatpush.msrb.mxu1 %v1775_v24  ;;  %1014 = vmatpush.msrb.mxu2 %v1802_v28 }
 0x74b   :  { %v692_v13 = vpop.f32.mrf.mxu1 }
 0x751   :  { %v712_v8 = vpop.f32.mrf.mxu2 }
 0x752   :  { %v717_v11 = vrot.slane %v712_v8, 6  ;;  %v899_v8 = vld [vmem:[#allocation2 + $0x18] sm:$0xf] }
 0x754   :  { %v718_v15 = vsel %vm215_vm2, %v692_v13, %v717_v11 }
 0x755   :  { %v720_v16 = vadd.f32 %v718_v15, %v671_v14 }
 0x757   :  { %1367 = vtanh.f32 %v720_v16 }
 0x75d   :  { %v1368_v17 = vpop.eup %1367 }
 0x75e   :  { %v722_v18 = vmul.f32 %v1368_v17, %v1887_v30 }
 0x760   :  { %v723_v19 = vadd.f32 %v722_v18, %v1890_v32 }
 0x762   :  { %735 = vrot.lane.b32.xlu2 %v723_v19, %s1412_s10  ;;  %v726_v20 = vrot.slane %v723_v19, 2  ;;  %v724_v23 = vmul.f32 %v723_v19, %v657_v31 }
 0x764   :  { %v728_v22 = vmul.f32 %v726_v20, %v723_v19 }
 0x766   :  { %730 = vrot.lane.b32.xlu1 %v728_v22, %s1412_s10 }
 0x7bc   :  { %v736_v28 = vpop.permute.xlu2 %735 }
 0x7bd   :  { %v737_v38 = vrot.slane %v736_v28, 2 }
 0x7d8   :  { %v731_v24 = vpop.permute.xlu1 %730 }
 0x7d9   :  { %v733_v25 = vadd.f32 %v731_v24, %v724_v23 }
 0x7db   :  { %1369 = vtanh.f32 %v733_v25 }
 0x7e1   :  { %v1370_v26 = vpop.eup %1369 }
 0x7e2   :  { %740 = vrot.lane.b32.xlu0 %v1370_v26, %s1412_s10 }
 0x854   :  { %v741_v39 = vpop.permute.xlu0 %740 }
 0x855   :  { %v743_v40 = vmul.f32 %v741_v39, %v737_v38 }
 0x857   :  { %745 = vst.msk [vmem:[#allocation3 + $0x6] sm:$0x3] %vm71_vm5, %v743_v40  ;;  %1313 = vmatmul.msk.f32.vlgmr.msrb.gmra.mxu3 %vm427_vm6, %v743_v40  ;;  %1314 = vmatmul.msk.f32.vlgmr.msrb.gmra.mxu0 %vm427_vm6, %v743_v40 }
 0x8d4   :  { %v788_v41 = vpop.f32.mrf.mxu0 }
 0x8d5   :  { %v793_v42 = vrot.slane %v788_v41, 6 }
 0x8da   :  { %v768_v43 = vpop.f32.mrf.mxu3 }
 0x8db   :  { %v794_v45 = vsel %vm215_vm2, %v768_v43, %v793_v42  ;;  %v975_v42 = vld [vmem:[#allocation2 + $0x1c] sm:$0xf] }
 0x8dc   :  { %v796_v46 = vadd.f32 %v794_v45, %v747_v44 }
 0x8de   :  { %1371 = vtanh.f32 %v796_v46 }
 0x8e4   :  { %v1372_v47 = vpop.eup %1371 }
 0x8e5   :  { %v798_v48 = vmul.f32 %v1372_v47, %v1887_v30 }
 0x8e7   :  { %v799_v49 = vadd.f32 %v798_v48, %v1890_v32 }
 0x8e9   :  { %811 = vrot.lane.b32.xlu2 %v799_v49, %s1412_s10  ;;  %v802_v50 = vrot.slane %v799_v49, 2  ;;  %v800_v52 = vmul.f32 %v799_v49, %v733_v25 }
 0x8eb   :  { %v804_v51 = vmul.f32 %v802_v50, %v799_v49  ;;  %v1073_v50 = vld [vmem:[%s2091_s14 + $0x38] sm:$0xff] }
 0x8ec   :  { %1115 = vmatpush.msrb.mxu3 %v1073_v50 }
 0x8ed   :  { %806 = vrot.lane.b32.xlu1 %v804_v51, %s1412_s10  ;;  %v1072_v51 = vld [vmem:[%s2091_s14 + $0x30] sm:$0xff] }
 0x8ee   :  { %1116 = vmatpush.msrb.mxu3 %v1072_v51 }
 0x943   :  { %v812_v56 = vpop.permute.xlu2 %811 }
 0x944   :  { %v813_v57 = vrot.slane %v812_v56, 2 }
 0x95f   :  { %v807_v53 = vpop.permute.xlu1 %806 }
 0x960   :  { %v809_v54 = vadd.f32 %v807_v53, %v800_v52  ;;  %v1069_v52 = vld [vmem:[%s2091_s14 + $0x18] sm:$0xff]  ;;  %v1068_v53 = vld [vmem:[%s2091_s14 + $0x10] sm:$0xff] }
 0x962   :  { %1373 = vtanh.f32 %v809_v54 }
 0x968   :  { %v1374_v55 = vpop.eup %1373 }
 0x969   :  { %816 = vrot.lane.b32.xlu0 %v1374_v55, %s1412_s10  ;;  %v1066_v55 = vld [vmem:[%s2091_s14] sm:$0xff] }
 0x9db   :  { %v817_v58 = vpop.permute.xlu0 %816 }
 0x9dc   :  { %v819_v59 = vmul.f32 %v817_v58, %v813_v57 }
 0x9de   :  { %821 = vst.msk [vmem:[#allocation3 + $0x8] sm:$0x3] %vm71_vm5, %v819_v59  ;;  %1315 = vmatmul.msk.f32.vlgmr.msra.gmra.mxu1 %vm427_vm6, %v819_v59  ;;  %1316 = vmatmul.msk.f32.vlgmr.msra.gmra.mxu2 %vm427_vm6, %v819_v59 }
 0x9e5   :  { %v1062_v60 = vld [vmem:[#allocation3 + $0x8] sm:$0x3] }
 0x9e6   :  { %1094 = vst [vmem:[#allocation1 + $0x20] ss:$4 sm:$0xff] %v1062_v60 }
 0xa5b   :  { %v844_v63 = vpop.f32.mrf.mxu1 }
 0xa61   :  { %v864_v61 = vpop.f32.mrf.mxu2 }
 0xa62   :  { %v869_v62 = vrot.slane %v864_v61, 6  ;;  %v1058_v61 = vld [vmem:[#allocation3] sm:$0x3] }
 0xa64   :  { %v870_v1 = vsel %vm215_vm2, %v844_v63, %v869_v62  ;;  %v1059_v62 = vld [vmem:[#allocation3 + $0x2] sm:$0x3]  ;;  %v1060_v63 = vld [vmem:[#allocation3 + $0x4] sm:$0x3] }
 0xa65   :  { %v872_v2 = vadd.f32 %v870_v1, %v823_v0  ;;  %v1061_v0 = vld [vmem:[#allocation3 + $0x6] sm:$0x3] }
 0xa67   :  { %1375 = vtanh.f32 %v872_v2 }
 0xa6d   :  { %v1376_v3 = vpop.eup %1375 }
 0xa6e   :  { %v874_v4 = vmul.f32 %v1376_v3, %v1887_v30 }
 0xa70   :  { %v875_v5 = vadd.f32 %v874_v4, %v1890_v32  ;;  %v1135_v4 = vld [vmem:[%s2093_s16 + $0x18] sm:$0x3f] }
 0xa71   :  { %1323 = vmatpush.msk.msrb.mxu0 %vm380_vm9, %v1135_v4 }
 0xa72   :  { %887 = vrot.lane.b32.xlu2 %v875_v5, %s1412_s10  ;;  %v878_v6 = vrot.slane %v875_v5, 2  ;;  %v876_v9 = vmul.f32 %v875_v5, %v809_v54  ;;  %v1067_v54 = vld [vmem:[%s2091_s14 + $0x8] sm:$0xff] }
 0xa74   :  { %v880_v7 = vmul.f32 %v878_v6, %v875_v5  ;;  %v1134_v6 = vld [vmem:[%s2093_s16 + $0x10] sm:$0xff] }
 0xa75   :  { %1163 = vmatpush.msrb.mxu0 %v1134_v6 }
 0xa76   :  { %882 = vrot.lane.b32.xlu1 %v880_v7, %s1412_s10 }
 0xacc   :  { %v888_v27 = vpop.permute.xlu2 %887 }
 0xacd   :  { %v889_v29 = vrot.slane %v888_v27, 2 }
 0xae8   :  { %v883_v10 = vpop.permute.xlu1 %882 }
 0xae9   :  { %v885_v12 = vadd.f32 %v883_v10, %v876_v9  ;;  %v1133_v9 = vld [vmem:[%s2093_s16 + $0x8] sm:$0xff]  ;;  %v1132_v10 = vld [vmem:[%s2093_s16] sm:$0xff] }
 0xaea   :  { %1164 = vmatpush.msrb.mxu0 %v1133_v9 }
 0xaeb   :  { %1377 = vtanh.f32 %v885_v12 }
 0xaec   :  { %1165 = vmatpush.msrb.mxu0 %v1132_v10 }
 0xaf1   :  { %v1378_v21 = vpop.eup %1377 }
 0xaf2   :  { %892 = vrot.lane.b32.xlu0 %v1378_v21, %s1412_s10  ;;  %v1413_v21 = vmov 0  }
 0xaf3   :  { %1329 = vset.pattern.permute.xlu2 %v1413_v21  ;;  %1330 = vset.pattern.permute.xlu0 %v1413_v21 }
 0xb64   :  { %v893_v31 = vpop.permute.xlu0 %892 }
 0xb65   :  { %v895_v33 = vmul.f32 %v893_v31, %v889_v29 }
 0xb67   :  { %897 = vst.msk [vmem:[#allocation3 + $0xa] sm:$0x3] %vm71_vm5, %v895_v33  ;;  %1317 = vmatmul.msk.f32.vlgmr.msra.gmra.mxu3 %vm427_vm6, %v895_v33  ;;  %1318 = vmatmul.msk.f32.vlgmr.msra.gmra.mxu0 %vm427_vm6, %v895_v33  ;;  %v1335_v33 = vld [vmem:[%s2092_s15] ss:$0 sm:$0xff] }
 0xb6e   :  { %v1063_v34 = vld [vmem:[#allocation3 + $0xa] sm:$0x3] }
 0xb6f   :  { %1096 = vst [vmem:[#allocation1 + $0x21] ss:$4 sm:$0xff] %v1063_v34 }
 0xbe4   :  { %v940_v35 = vpop.f32.mrf.mxu0 }
 0xbe5   :  { %v945_v36 = vrot.slane %v940_v35, 6 }
 0xbea   :  { %v920_v37 = vpop.f32.mrf.mxu3 }
 0xbeb   :  { %v946_v11 = vsel %vm215_vm2, %v920_v37, %v945_v36 }
 0xbec   :  { %v948_v13 = vadd.f32 %v946_v11, %v899_v8 }
 0xbee   :  { %1379 = vtanh.f32 %v948_v13  ;;  %v1337_v13 = vld [vmem:[%s2095_s17] ss:$0 sm:$0xff] }
 0xbf4   :  { %v1380_v14 = vpop.eup %1379 }
 0xbf5   :  { %v950_v15 = vmul.f32 %v1380_v14, %v1887_v30 }
 0xbf7   :  { %v951_v16 = vadd.f32 %v950_v15, %v1890_v32 }
 0xbf9   :  { %963 = vrot.lane.b32.xlu2 %v951_v16, %s1412_s10  ;;  %v954_v17 = vrot.slane %v951_v16, 2  ;;  %v952_v19 = vmul.f32 %v951_v16, %v885_v12  ;;  %v25_v12 = vstv %s2094_s19 }
 0xbfa   :  { %26 = vst [vmem:[#allocation6] sm:$0x1] %v25_v12 }
 0xbfb   :  { %v956_v18 = vmul.f32 %v954_v17, %v951_v16  ;;  %v1338_v16 = vld [vmem:[%s2096_s18] ss:$0 sm:$0xff] }
 0xbfd   :  { %958 = vrot.lane.b32.xlu1 %v956_v18, %s1412_s10 }
 0xc01   :  { %v1336_v29 = vld [vmem:[#allocation6] ss:$0 sm:$0xff] }
 0xc53   :  { %v964_v24 = vpop.permute.xlu2 %963 }
 0xc54   :  { %v965_v25 = vrot.slane %v964_v24, 2 }
 0xc6f   :  { %v959_v20 = vpop.permute.xlu1 %958 }
 0xc70   :  { %v961_v22 = vadd.f32 %v959_v20, %v952_v19 }
 0xc72   :  { %1381 = vtanh.f32 %v961_v22 }
 0xc78   :  { %v1382_v23 = vpop.eup %1381 }
 0xc79   :  { %968 = vrot.lane.b32.xlu0 %v1382_v23, %s1412_s10 }
 0xceb   :  { %v969_v26 = vpop.permute.xlu0 %968 }
 0xcec   :  { %v971_v28 = vmul.f32 %v969_v26, %v965_v25 }
 0xcee   :  { %973 = vst.msk [vmem:[#allocation3 + $0xc] sm:$0x3] %vm71_vm5, %v971_v28  ;;  %1319 = vmatmul.msk.f32.vlgmr.msrb.gmra.mxu1 %vm427_vm6, %v971_v28  ;;  %1320 = vmatmul.msk.f32.vlgmr.msrb.gmra.mxu2 %vm427_vm6, %v971_v28 }
 0xcf5   :  { %v1064_v38 = vld [vmem:[#allocation3 + $0xc] sm:$0x3] }
 0xcf6   :  { %1098 = vst [vmem:[#allocation1 + $0x22] ss:$4 sm:$0xff] %v1064_v38 }
 0xd6b   :  { %v996_v41 = vpop.f32.mrf.mxu1 }
 0xd71   :  { %v1016_v39 = vpop.f32.mrf.mxu2 }
 0xd72   :  { %v1021_v40 = vrot.slane %v1016_v39, 6 }
 0xd74   :  { %v1022_v43 = vsel %vm215_vm2, %v996_v41, %v1021_v40  ;;  %vm1279_vm2 = vcmask 1047559  }
 0xd75   :  { %v1024_v44 = vadd.f32 %v1022_v43, %v975_v42 }
 0xd77   :  { %1383 = vtanh.f32 %v1024_v44 }
 0xd7d   :  { %v1384_v45 = vpop.eup %1383 }
 0xd7e   :  { %v1026_v46 = vmul.f32 %v1384_v45, %v1887_v30  ;;  %v1071_v30 = vld [vmem:[%s2091_s14 + $0x28] sm:$0xff] }
 0xd7f   :  { %1117 = vmatpush.msrb.mxu3 %v1071_v30 }
 0xd80   :  { %v1027_v47 = vadd.f32 %v1026_v46, %v1890_v32  ;;  %v1070_v32 = vld [vmem:[%s2091_s14 + $0x20] sm:$0xff] }
 0xd81   :  { %1118 = vmatpush.msrb.mxu3 %v1070_v32 }
 0xd82   :  { %1039 = vrot.lane.b32.xlu2 %v1027_v47, %s1412_s10  ;;  %v1030_v48 = vrot.slane %v1027_v47, 2  ;;  %v1028_v56 = vmul.f32 %v1027_v47, %v961_v22 }
 0xd83   :  { %1119 = vmatpush.msrb.mxu3 %v1069_v52 }
 0xd84   :  { %v1032_v49 = vmul.f32 %v1030_v48, %v1027_v47 }
 0xd85   :  { %1120 = vmatpush.msrb.mxu3 %v1068_v53 }
 0xd86   :  { %1034 = vrot.lane.b32.xlu1 %v1032_v49, %s1412_s10 }
 0xd87   :  { %1121 = vmatpush.msrb.mxu3 %v1067_v54 }
 0xd89   :  { %1122 = vmatpush.msrb.mxu3 %v1066_v55 }
 0xd8a   :  { %1230 = vperm.xlu2 %1329, %v1336_v29  }
 0xddc   :  { %v1040_v2 = vpop.permute.xlu2 %1039 }
 0xddd   :  { %v1041_v3 = vrot.slane %v1040_v2, 2 }
 0xde4   :  { %v1231_v40 = vpop.permute.xlu2 %1230 }
 0xdf8   :  { %v1035_v57 = vpop.permute.xlu1 %1034 }
 0xdf9   :  { %v1037_v58 = vadd.f32 %v1035_v57, %v1028_v56 }
 0xdfb   :  { %1385 = vtanh.f32 %v1037_v58  ;;  %1052 = vst [vmem:[#allocation1] ss:$4 sm:$0xff] %v1037_v58 }
 0xe01   :  { %v1386_v59 = vpop.eup %1385 }
 0xe02   :  { %v2031_v60 = vld.sshfl [vmem:[#allocation1] sm:$0xff pattern:$0x73625140]  ;;  %1044 = vrot.lane.b32.xlu0 %v1386_v59, %s1412_s10 }
 0xe03   :  { %1086 = vst [vmem:[#allocation1] ss:$4 sm:$0xff] %v1058_v61 }
 0xe04   :  { %1088 = vst [vmem:[#allocation1 + $0x1] ss:$4 sm:$0xff] %v1059_v62 }
 0xe05   :  { %1090 = vst [vmem:[#allocation1 + $0x2] ss:$4 sm:$0xff] %v1060_v63  ;;  %v1257_v63 = vlaneseq }
 0xe06   :  { %1092 = vst [vmem:[#allocation1 + $0x3] ss:$4 sm:$0xff] %v1061_v0 }
 0xe07   :  { %v1258_v4 = vand.u32 127, %v1257_v63 }
 0xe0d   :  { %v1101_v1 = vld.sshfl [vmem:[#allocation1] sm:$0xff pattern:$0x73625140] }
 0xe0e   :  { %1321 = vmatmul.msk.f32.vlgmr.msrb.gmra.mxu3 %vm427_vm6, %v1101_v1 }
 0xe74   :  { %v1045_v5 = vpop.permute.xlu0 %1044 }
 0xe75   :  { %v1047_v7 = vmul.f32 %v1045_v5, %v1041_v3 }
 0xe77   :  { %1049 = vst.msk [vmem:[#allocation3 + $0xe] sm:$0x3] %vm71_vm5, %v1047_v7 }
 0xe78   :  { %1050 = vst.msk [vmem:[#allocation4] sm:$0x3] %vm71_vm5, %v1047_v7 }
 0xe7e   :  { %v1065_v27 = vld [vmem:[#allocation3 + $0xe] sm:$0x3] }
 0xe7f   :  { %1100 = vst [vmem:[#allocation1 + $0x23] ss:$4 sm:$0xff] %v1065_v27 }
 0xe86   :  { %v1102_v31 = vld.sshfl [vmem:[#allocation1 + $0x20] sm:$0xff pattern:$0x73625140] }
 0xe87   :  { %1322 = vmatmul.msk.f32.gmra.mxu3 %vm427_vm6, %v1102_v31 }
 0xe91   :  { %v1124_v34 = vpop.f32.mrf.mxu3 }
 0xe92   :  { %v1125_v35 = vadd.f32 %v1335_v33, %v1124_v34 }
 0xe94   :  { %1387 = vtanh.f32 %v1125_v35 }
 0xe9a   :  { %v1388_v36 = vpop.eup %1387 }
 0xe9b   :  { %1324 = vmatmul.msk.f32.vlgmr.msrb.gmra.mxu0 %vm1140_vm10, %v1388_v36 }
 0xf0a   :  { %v1127_v37 = vpop.f32.mrf.mxu3 }
 0xf0b   :  { %v1128_v8 = vadd.f32 %v1335_v33, %v1127_v37 }
 0xf0d   :  { %1389 = vtanh.f32 %v1128_v8 }
 0xf13   :  { %v1390_v11 = vpop.eup %1389 }
 0xf14   :  { %1325 = vmatmul.msk.f32.gmra.mxu0 %vm1140_vm10, %v1390_v11 }
 0xf18   :  { %v1167_v14 = vpop.f32.mrf.mxu0 }
 0xf19   :  { %v1168_v15 = vadd.f32 %v1337_v13, %v1167_v14 }
 0xf1b   :  { %1391 = vtanh.f32 %v1168_v15 }
 0xf21   :  { %v1392_v17 = vpop.eup %1391 }
 0xf22   :  { %v1193_v18 = vmul.f32 %v1392_v17, %v1338_v16  ;;  %v1178_v19 = vrot.slane %v1392_v17, 4  ;;  %v1177_v20 = vrot.slane %v1392_v17, 2  ;;  %v1179_v25 = vrot.slane %v1392_v17, 6 }
 0xf24   :  { %v1202_v22 = vsel %vm1201_vm11, %v1193_v18, 0.0  ;;  %v1195_v23 = vmul.f32 %v1338_v16, %v1178_v19  ;;  %v1194_v24 = vmul.f32 %v1338_v16, %v1177_v20  ;;  %v1196_v38 = vmul.f32 %v1338_v16, %v1179_v25 }
 0xf25   :  { %1203 = vadd.xlane.f32.xlu1 %v1202_v22 }
 0xf26   :  { %v1208_v26 = vsel %vm1201_vm11, %v1195_v23, 0.0  ;;  %v1205_v28 = vsel %vm1201_vm11, %v1194_v24, 0.0  ;;  %v1211_v39 = vsel %vm1201_vm11, %v1196_v38, 0.0 }
 0xf27   :  { %1209 = vadd.xlane.f32.xlu0 %v1208_v26  ;;  %1206 = vadd.xlane.f32.xlu2 %v1205_v28 }
 0xf2d   :  { %1212 = vadd.xlane.f32.xlu1 %v1211_v39 }
 0xf3f   :  { %1054 = vrot.lane.b32.xlu2 %v2031_v60, %s1412_s10 }
 0xf91   :  { %v1170_v41 = vpop.f32.mrf.mxu0 }
 0xf92   :  { %v1171_v42 = vadd.f32 %v1337_v13, %v1170_v41 }
 0xf94   :  { %1393 = vtanh.f32 %v1171_v42 }
 0xf98   :  { %v1204_v55 = vpop.xlane.xlu1 %1203 }
 0xf99   :  { %v1233_v59 = vadd.f32 %v1231_v40, %v1204_v55 }
 0xf9a   :  { %v1394_v43 = vpop.eup %1393  ;;  %v1207_v44 = vpop.xlane.xlu2 %1206 }
 0xf9b   :  { %v1197_v45 = vmul.f32 %v1394_v43, %v1338_v16  ;;  %v1180_v46 = vrot.slane %v1394_v43, 2  ;;  %v1181_v48 = vrot.slane %v1394_v43, 4  ;;  %v1182_v51 = vrot.slane %v1394_v43, 6  ;;  %v1210_v56 = vpop.xlane.xlu0 %1209 }
 0xf9c   :  { %v1234_v57 = vadd.f32 %v1231_v40, %v1207_v44  ;;  %v1235_v60 = vadd.f32 %v1231_v40, %v1210_v56 }
 0xf9d   :  { %v1214_v47 = vsel %vm1201_vm11, %v1197_v45, 0.0  ;;  %v1198_v49 = vmul.f32 %v1338_v16, %v1180_v46  ;;  %v1199_v30 = vmul.f32 %v1338_v16, %v1181_v48  ;;  %v1200_v52 = vmul.f32 %v1338_v16, %v1182_v51 }
 0xf9e   :  { %1215 = vadd.xlane.f32.xlu0 %v1214_v47  ;;  %1395 = vtanh.f32 %v1234_v57 }
 0xf9f   :  { %v1217_v50 = vsel %vm1201_vm11, %v1198_v49, 0.0  ;;  %v1220_v53 = vsel %vm1201_vm11, %v1199_v30, 0.0  ;;  %v1223_v54 = vsel %vm1201_vm11, %v1200_v52, 0.0  ;;  %1397 = vtanh.f32 %v1233_v59 }
 0xfa0   :  { %1218 = vadd.xlane.f32.xlu1 %v1217_v50  ;;  %v1213_v58 = vpop.xlane.xlu1 %1212  ;;  %1399 = vtanh.f32 %v1235_v60 }
 0xfa1   :  { %v1236_v61 = vadd.f32 %v1231_v40, %v1213_v58 }
 0xfa2   :  { %v1055_v32 = vpop.permute.xlu2 %1054 }
 0xfa3   :  { %1057 = vst.msk [vmem:[#allocation5] sm:$0x3] %vm71_vm5, %v1055_v32  ;;  %1401 = vtanh.f32 %v1236_v61 }
 0xfa4   :  { %v1396_v2 = vpop.eup %1395 }
 0xfa5   :  { %v1398_v5 = vpop.eup %1397  ;;  %v1260_v7 = vperm.slane %v1396_v2, %v1258_v4 }
 0xfa6   :  { %1221 = vadd.xlane.f32.xlu0 %v1220_v53  ;;  %v1400_v6 = vpop.eup %1399  ;;  %v1259_v21 = vperm.slane %v1398_v5, %v1258_v4 }
 0xfa7   :  { %v1261_v29 = vperm.slane %v1400_v6, %v1258_v4 }
 0xfa8   :  { %1224 = vadd.xlane.f32.xlu1 %v1223_v54  ;;  %v1268_v31 = vsel %vm1267_vm12, %v1260_v7, %v1259_v21 }
 0xfa9   :  { %v1402_v9 = vpop.eup %1401  ;;  %v1270_v8 = vsel %vm1269_vm13, %v1261_v29, %v1268_v31 }
 0xfaa   :  { %v1262_v33 = vperm.slane %v1402_v9, %v1258_v4 }
 0xfac   :  { %v1272_v11 = vsel %vm1271_vm14, %v1262_v33, %v1270_v8 }
0x1011   :  { %v1216_v62 = vpop.xlane.xlu0 %1215 }
0x1012   :  { %v1237_v0 = vadd.f32 %v1231_v40, %v1216_v62 }
0x1013   :  { %v1219_v1 = vpop.xlane.xlu1 %1218 }
0x1014   :  { %1403 = vtanh.f32 %v1237_v0  ;;  %v1238_v3 = vadd.f32 %v1231_v40, %v1219_v1 }
0x1016   :  { %1405 = vtanh.f32 %v1238_v3 }
0x1019   :  { %v1222_v10 = vpop.xlane.xlu0 %1221 }
0x101a   :  { %v1404_v12 = vpop.eup %1403  ;;  %v1239_v27 = vadd.f32 %v1231_v40, %v1222_v10 }
0x101b   :  { %v1225_v34 = vpop.xlane.xlu1 %1224  ;;  %v1263_v36 = vperm.slane %v1404_v12, %v1258_v4 }
0x101c   :  { %1407 = vtanh.f32 %v1239_v27  ;;  %v1406_v35 = vpop.eup %1405  ;;  %v1240_v37 = vadd.f32 %v1231_v40, %v1225_v34 }
0x101d   :  { %v1264_v13 = vperm.slane %v1406_v35, %v1258_v4  ;;  %v1274_v14 = vsel %vm1273_vm15, %v1263_v36, %v1272_v11 }
0x101e   :  { %1409 = vtanh.f32 %v1240_v37 }
0x101f   :  { %v1276_v17 = vsel %vm1275_vm0, %v1264_v13, %v1274_v14 }
0x1022   :  { %v1408_v15 = vpop.eup %1407 }
0x1023   :  { %v1265_v16 = vperm.slane %v1408_v15, %v1258_v4 }
0x1024   :  { %v1410_v18 = vpop.eup %1409 }
0x1025   :  { %v1278_v19 = vsel %vm1277_vm1, %v1265_v16, %v1276_v17  ;;  %v1266_v20 = vperm.slane %v1410_v18, %v1258_v4 }
0x1027   :  { %v1280_v22 = vsel %vm1279_vm2, %v1266_v20, %v1278_v19 }
0x1028   :  { %1283 = vst.msk [vmem:[%s2097_s20] sm:$0xff] %vm1282_vm3, %v1280_v22 }

</bundles_post_ra>
